<compile_context>
chip_gen: v6e
topology: v6e:2x2x1
jax: 0.10.0
libtpu: 0.0.40
codegen_flags: <defaults>
</compile_context>

<pallas_src>
import functools
import math

import jax
import jax.numpy as jnp
from jax.experimental import pallas as pl
from jax.experimental.pallas import tpu as pltpu

_SUBLANE = 8  # f32 sublane tile height


def _lstm_chunk_kernel(x_ref, wih_ref, whh_ref, b_ref, out_ref,
                       h_scr, c_scr, pre_scr, *, tb, n_pad, hidden):
    """One grid step = `tb` LSTM time steps for one layer.

    x_ref   : (tb * n_pad, D_in)  time-major rows (batch padded to n_pad)
    wih_ref : (D_in, 4H)          VMEM-resident (constant index_map)
    whh_ref : (H, 4H)             VMEM-resident (constant index_map)
    b_ref   : (1, 4H)             b_ih + b_hh
    out_ref : (tb * n_pad, H)
    h_scr   : (n_pad, H)          h carry across grid (time-chunk) steps
    c_scr   : (n_pad, H)          c carry across grid (time-chunk) steps
    pre_scr : (tb * n_pad, 4H)    staged input projection for the chunk
    """
    @pl.when(pl.program_id(0) == 0)
    def _():
        h_scr[...] = jnp.zeros_like(h_scr)
        c_scr[...] = jnp.zeros_like(c_scr)

    # Hoisted input projection + bias: one big MXU matmul per chunk instead of
    # one tiny matmul (and a bias broadcast) per time step.
    pre_scr[...] = (
        jnp.dot(x_ref[...], wih_ref[...], preferred_element_type=jnp.float32)
        + b_ref[...]
    )

    whh = whh_ref[...]  # (H, 4H), hoisted load

    def step(t, carry):
        h_prev, c_prev = carry
        row = pl.multiple_of(t * n_pad, n_pad)
        gates = pre_scr[pl.ds(row, n_pad), :] + jnp.dot(
            h_prev, whh, preferred_element_type=jnp.float32)
        # PyTorch gate order: (i, f, g, o)
        i_g = jax.nn.sigmoid(gates[:, 0 * hidden:1 * hidden])
        f_g = jax.nn.sigmoid(gates[:, 1 * hidden:2 * hidden])
        g_g = jnp.tanh(gates[:, 2 * hidden:3 * hidden])
        o_g = jax.nn.sigmoid(gates[:, 3 * hidden:4 * hidden])
        c_new = f_g * c_prev + i_g * g_g
        h_new = o_g * jnp.tanh(c_new)
        out_ref[pl.ds(row, n_pad), :] = h_new.astype(out_ref.dtype)
        return (h_new, c_new)

    # (h, c) stay in registers within the chunk; unrolled for LLO visibility.
    h, c = jax.lax.fori_loop(0, tb, step, (h_scr[...], c_scr[...]),
                             unroll=True)
    h_scr[...] = h
    c_scr[...] = c


def _run_lstm_layer(x_flat, w_ih_t, w_hh_t, bias, *, n_pad, tb):
    """x_flat: (T_pad*N_pad, D_in) f32; returns (T_pad*N_pad, H) f32."""
    rows, d_in = x_flat.shape
    hidden = w_hh_t.shape[0]
    num_chunks = rows // (tb * n_pad)

    kernel = functools.partial(_lstm_chunk_kernel, tb=tb, n_pad=n_pad,
                               hidden=hidden)
    return pl.pallas_call(
        kernel,
        out_shape=jax.ShapeDtypeStruct((rows, hidden), jnp.float32),
        grid_spec=pltpu.PrefetchScalarGridSpec(
            num_scalar_prefetch=0,
            grid=(num_chunks,),
            in_specs=[
                pl.BlockSpec((tb * n_pad, d_in), lambda t: (t, 0)),
                pl.BlockSpec((d_in, 4 * hidden), lambda t: (0, 0)),
                pl.BlockSpec((hidden, 4 * hidden), lambda t: (0, 0)),
                pl.BlockSpec((1, 4 * hidden), lambda t: (0, 0)),
            ],
            out_specs=pl.BlockSpec((tb * n_pad, hidden), lambda t: (t, 0)),
            scratch_shapes=[
                pltpu.VMEM((n_pad, hidden), jnp.float32),            # h carry
                pltpu.VMEM((n_pad, hidden), jnp.float32),            # c carry
                pltpu.VMEM((tb * n_pad, 4 * hidden), jnp.float32),   # pre-gates
            ],
        ),
        compiler_params=pltpu.CompilerParams(
            dimension_semantics=("arbitrary",),  # time chunks are sequential
        ),
    )(x_flat, w_ih_t, w_hh_t, bias)


class BandedLSTMPallas:
    """JAX/Pallas equivalent of the PyTorch BandedLSTM module."""

    def __init__(self, input_size: int, hidden_size: int, num_layers: int = 1,
                 key=None, time_block: int = 32):
        self.input_size = input_size
        self.hidden_size = hidden_size
        self.num_layers = num_layers
        self.time_block = time_block

        if key is None:
            key = jax.random.PRNGKey(0)
        bound = 1.0 / jnp.sqrt(jnp.asarray(hidden_size, jnp.float32))

        self.params = []
        for layer in range(num_layers):
            d_in = input_size if layer == 0 else hidden_size
            key, k1, k2, k3, k4 = jax.random.split(key, 5)
            # PyTorch layout is (4H, d_in) / (4H, H); store transposed for matmul.
            w_ih = jax.random.uniform(k1, (4 * hidden_size, d_in),
                                      jnp.float32, -bound, bound)
            w_hh = jax.random.uniform(k2, (4 * hidden_size, hidden_size),
                                      jnp.float32, -bound, bound)
            b_ih = jax.random.uniform(k3, (4 * hidden_size,),
                                      jnp.float32, -bound, bound)
            b_hh = jax.random.uniform(k4, (4 * hidden_size,),
                                      jnp.float32, -bound, bound)
            self.params.append(
                (w_ih.T, w_hh.T, (b_ih + b_hh).reshape(1, 4 * hidden_size))
            )

    @functools.partial(jax.jit, static_argnums=0)
    def __call__(self, inputs):
        T, N, B, C, F = inputs.shape
        assert B * C * F == self.input_size, (
            f"Incompatible LSTM inputs ({B}x{C}x{F} != {self.input_size})"
        )
        x = jnp.reshape(inputs, (T, N, self.input_size)).astype(jnp.float32)

        # Pad batch to a full sublane tile and time to a multiple of the chunk.
        tb = max(1, min(self.time_block, T))
        t_pad = math.ceil(T / tb) * tb
        n_pad = max(_SUBLANE, math.ceil(N / _SUBLANE) * _SUBLANE)
        x = jnp.pad(x, ((0, t_pad - T), (0, n_pad - N), (0, 0)))
        # Flatten to 2-D (time-major rows) so the kernel needs no reshapes.
        x = jnp.reshape(x, (t_pad * n_pad, self.input_size))

        # TODO(synk): fuse layers into one kernel (weight prefetch) to avoid
        # per-layer HBM round-trips of the activations.
        for (w_ih_t, w_hh_t, bias) in self.params:
            x = _run_lstm_layer(x, w_ih_t, w_hh_t, bias, n_pad=n_pad, tb=tb)

        x = jnp.reshape(x, (t_pad, n_pad, self.hidden_size))
        return x[:T, :N, :]


def _reference_lstm(inputs, params, input_size, hidden_size):
    """Pure-JAX reference (lax.scan) matching PyTorch nn.LSTM semantics."""
    T, N = inputs.shape[0], inputs.shape[1]
    x = jnp.reshape(inputs, (T, N, input_size)).astype(jnp.float32)
    for (w_ih_t, w_hh_t, bias) in params:
        H = hidden_size

        def step(carry, x_t):
            h, c = carry
            gates = x_t @ w_ih_t + h @ w_hh_t + bias
            i = jax.nn.sigmoid(gates[:, 0 * H:1 * H])
            f = jax.nn.sigmoid(gates[:, 1 * H:2 * H])
            g = jnp.tanh(gates[:, 2 * H:3 * H])
            o = jax.nn.sigmoid(gates[:, 3 * H:4 * H])
            c = f * c + i * g
            h = o * jnp.tanh(c)
            return (h, c), h

        init = (jnp.zeros((N, H), jnp.float32), jnp.zeros((N, H), jnp.float32))
        _, x = jax.lax.scan(step, init, x)
    return x


if __name__ == "__main__":
    # Small shapes consistent with the module: T=8, N=2, bands B=2, C=2, F=4.
    T, N, B, C, F = 8, 2, 2, 2, 4
    input_size = B * C * F          # 16
    hidden_size = 32
    num_layers = 2

    key = jax.random.PRNGKey(0)
    key, k_in = jax.random.split(key)
    inputs = jax.random.normal(k_in, (T, N, B, C, F), jnp.float32)

    model = BandedLSTMPallas(input_size, hidden_size, num_layers,
                             key=jax.random.PRNGKey(42))

    out = model(inputs)
    out = jax.block_until_ready(out)
    assert out.shape == (T, N, hidden_size), out.shape

    ref = _reference_lstm(inputs, model.params, input_size, hidden_size)
    ref = jax.block_until_ready(ref)
    assert jnp.allclose(out, ref, atol=1e-5, rtol=1e-5), (
        float(jnp.max(jnp.abs(out - ref)))
    )

    print("KERNEL_OK")
</pallas_src>

<mosaic_0001>
module attributes {stable_mosaic.version = 11 : i64} {
  func.func @_lstm_chunk_kernel(%arg0: i32, %arg1: memref<64x32xf32, #tpu.memory_space<vmem>>, %arg2: memref<32x128xf32, #tpu.memory_space<vmem>>, %arg3: memref<32x128xf32, #tpu.memory_space<vmem>>, %arg4: memref<1x128xf32, #tpu.memory_space<vmem>>, %arg5: memref<64x32xf32, #tpu.memory_space<vmem>>, %arg6: memref<8x32xf32, #tpu.memory_space<vmem>>, %arg7: memref<8x32xf32, #tpu.memory_space<vmem>>, %arg8: memref<64x128xf32, #tpu.memory_space<vmem>>) attributes {dimension_semantics = [#tpu.dimension_semantics<arbitrary>], iteration_bounds = array<i64: 1>, scalar_prefetch = 0 : i64, scratch_operands = 3 : i64, tpu.core_type = #tpu.core_type<tc>, window_params = [{transform_indices = @transform_0, window_bounds = array<i64: 64, 32>}, {pipeline_mode = #tpu.pipeline_mode<synchronous>, transform_indices = @transform_1, window_bounds = array<i64: 32, 128>}, {pipeline_mode = #tpu.pipeline_mode<synchronous>, transform_indices = @transform_2, window_bounds = array<i64: 32, 128>}, {pipeline_mode = #tpu.pipeline_mode<synchronous>, transform_indices = @transform_3, window_bounds = array<i64: 1, 128>}, {transform_indices = @transform_4, window_bounds = array<i64: 64, 32>}]} {
    %c0_i32 = arith.constant 0 : i32
    %0 = arith.cmpi eq, %arg0, %c0_i32 : i32
    %1 = arith.extui %0 : i1 to i32
    %c0_i32_0 = arith.constant 0 : i32
    %2 = arith.cmpi ne, %1, %c0_i32_0 : i32
    scf.if %2 {
      %cst_75 = arith.constant 0.000000e+00 : f32
      %279 = vector.broadcast %cst_75 : f32 to vector<8x32xf32>
      %c0_76 = arith.constant 0 : index
      %c0_77 = arith.constant 0 : index
      %280 = vector.load %arg6[%c0_76, %c0_77] : memref<8x32xf32, #tpu.memory_space<vmem>>, vector<8x32xf32>
      tpu.vector_store %arg6[%c0_76, %c0_77], %279 {strides = array<i32>} : memref<8x32xf32, #tpu.memory_space<vmem>>, vector<8x32xf32>,
      %cst_78 = arith.constant 0.000000e+00 : f32
      %281 = vector.broadcast %cst_78 : f32 to vector<8x32xf32>
      %c0_79 = arith.constant 0 : index
      %c0_80 = arith.constant 0 : index
      %282 = vector.load %arg7[%c0_79, %c0_80] : memref<8x32xf32, #tpu.memory_space<vmem>>, vector<8x32xf32>
      tpu.vector_store %arg7[%c0_79, %c0_80], %281 {strides = array<i32>} : memref<8x32xf32, #tpu.memory_space<vmem>>, vector<8x32xf32>,
    } else {
    }
    %c0 = arith.constant 0 : index
    %c0_1 = arith.constant 0 : index
    %3 = vector.load %arg1[%c0, %c0_1] : memref<64x32xf32, #tpu.memory_space<vmem>>, vector<64x32xf32>
    %c0_2 = arith.constant 0 : index
    %c0_3 = arith.constant 0 : index
    %4 = vector.load %arg2[%c0_2, %c0_3] : memref<32x128xf32, #tpu.memory_space<vmem>>, vector<32x128xf32>
    %cst = arith.constant dense<0.000000e+00> : vector<64x128xf32>
    %5 = tpu.matmul %3, %4, %cst {dimension_numbers = #tpu.dot_dimension_numbers<[1], [0], [0], [1], [0, 0, 1, 1], [], []>} : vector<64x32xf32>, vector<32x128xf32>, vector<64x128xf32> -> vector<64x128xf32>
    %c0_4 = arith.constant 0 : index
    %c0_5 = arith.constant 0 : index
    %6 = vector.load %arg4[%c0_4, %c0_5] : memref<1x128xf32, #tpu.memory_space<vmem>>, vector<1x128xf32>
    %7 = vector.broadcast %6 : vector<1x128xf32> to vector<64x128xf32>
    %8 = arith.addf %5, %7 : vector<64x128xf32>
    %c0_6 = arith.constant 0 : index
    %c0_7 = arith.constant 0 : index
    %9 = vector.load %arg8[%c0_6, %c0_7] : memref<64x128xf32, #tpu.memory_space<vmem>>, vector<64x128xf32>
    tpu.vector_store %arg8[%c0_6, %c0_7], %8 {strides = array<i32>} : memref<64x128xf32, #tpu.memory_space<vmem>>, vector<64x128xf32>,
    %c0_8 = arith.constant 0 : index
    %c0_9 = arith.constant 0 : index
    %10 = vector.load %arg3[%c0_8, %c0_9] : memref<32x128xf32, #tpu.memory_space<vmem>>, vector<32x128xf32>
    %c0_10 = arith.constant 0 : index
    %c0_11 = arith.constant 0 : index
    %11 = vector.load %arg6[%c0_10, %c0_11] : memref<8x32xf32, #tpu.memory_space<vmem>>, vector<8x32xf32>
    %c0_12 = arith.constant 0 : index
    %c0_13 = arith.constant 0 : index
    %12 = vector.load %arg7[%c0_12, %c0_13] : memref<8x32xf32, #tpu.memory_space<vmem>>, vector<8x32xf32>
    %c0_i32_14 = arith.constant 0 : i32
    %c8_i32 = arith.constant 8 : i32
    %13 = arith.muli %c0_i32_14, %c8_i32 : i32
    %14 = tpu.assume_multiple %13, 8 : i32
    %15 = arith.index_cast %14 : i32 to index
    %c0_15 = arith.constant 0 : index
    %16 = vector.load %arg8[%15, %c0_15] : memref<64x128xf32, #tpu.memory_space<vmem>>, vector<8x128xf32>
    %cst_16 = arith.constant dense<0.000000e+00> : vector<8x128xf32>
    %17 = tpu.matmul %11, %10, %cst_16 {dimension_numbers = #tpu.dot_dimension_numbers<[1], [0], [0], [1], [0, 0, 1, 1], [], []>} : vector<8x32xf32>, vector<32x128xf32>, vector<8x128xf32> -> vector<8x128xf32>
    %18 = arith.addf %16, %17 : vector<8x128xf32>
    %19 = vector.extract_strided_slice %18 {offsets = [0, 0], sizes = [8, 32], strides = [1, 1]} : vector<8x128xf32> to vector<8x32xf32>
    %20 = arith.negf %19 : vector<8x32xf32>
    %21 = math.exp %20 : vector<8x32xf32>
    %cst_17 = arith.constant 1.000000e+00 : f32
    %22 = vector.broadcast %cst_17 : f32 to vector<8x32xf32>
    %23 = arith.addf %22, %21 : vector<8x32xf32>
    %24 = arith.divf %22, %23 : vector<8x32xf32>
    %25 = vector.extract_strided_slice %18 {offsets = [0, 32], sizes = [8, 32], strides = [1, 1]} : vector<8x128xf32> to vector<8x32xf32>
    %26 = arith.negf %25 : vector<8x32xf32>
    %27 = math.exp %26 : vector<8x32xf32>
    %cst_18 = arith.constant 1.000000e+00 : f32
    %28 = vector.broadcast %cst_18 : f32 to vector<8x32xf32>
    %29 = arith.addf %28, %27 : vector<8x32xf32>
    %30 = arith.divf %28, %29 : vector<8x32xf32>
    %31 = vector.extract_strided_slice %18 {offsets = [0, 64], sizes = [8, 32], strides = [1, 1]} : vector<8x128xf32> to vector<8x32xf32>
    %32 = math.tanh %31 : vector<8x32xf32>
    %33 = vector.extract_strided_slice %18 {offsets = [0, 96], sizes = [8, 32], strides = [1, 1]} : vector<8x128xf32> to vector<8x32xf32>
    %34 = arith.negf %33 : vector<8x32xf32>
    %35 = math.exp %34 : vector<8x32xf32>
    %cst_19 = arith.constant 1.000000e+00 : f32
    %36 = vector.broadcast %cst_19 : f32 to vector<8x32xf32>
    %37 = arith.addf %36, %35 : vector<8x32xf32>
    %38 = arith.divf %36, %37 : vector<8x32xf32>
    %39 = arith.mulf %30, %12 : vector<8x32xf32>
    %40 = arith.mulf %24, %32 : vector<8x32xf32>
    %41 = arith.addf %39, %40 : vector<8x32xf32>
    %42 = math.tanh %41 : vector<8x32xf32>
    %43 = arith.mulf %38, %42 : vector<8x32xf32>
    %44 = arith.index_cast %14 : i32 to index
    %c0_20 = arith.constant 0 : index
    %45 = vector.load %arg5[%44, %c0_20] : memref<64x32xf32, #tpu.memory_space<vmem>>, vector<8x32xf32>
    tpu.vector_store %arg5[%44, %c0_20], %43 {strides = array<i32>} : memref<64x32xf32, #tpu.memory_space<vmem>>, vector<8x32xf32>,
    %c1_i32 = arith.constant 1 : i32
    %c8_i32_21 = arith.constant 8 : i32
    %46 = arith.muli %c1_i32, %c8_i32_21 : i32
    %47 = tpu.assume_multiple %46, 8 : i32
    %48 = arith.index_cast %47 : i32 to index
    %c0_22 = arith.constant 0 : index
    %49 = vector.load %arg8[%48, %c0_22] : memref<64x128xf32, #tpu.memory_space<vmem>>, vector<8x128xf32>
    %cst_23 = arith.constant dense<0.000000e+00> : vector<8x128xf32>
    %50 = tpu.matmul %43, %10, %cst_23 {dimension_numbers = #tpu.dot_dimension_numbers<[1], [0], [0], [1], [0, 0, 1, 1], [], []>} : vector<8x32xf32>, vector<32x128xf32>, vector<8x128xf32> -> vector<8x128xf32>
    %51 = arith.addf %49, %50 : vector<8x128xf32>
    %52 = vector.extract_strided_slice %51 {offsets = [0, 0], sizes = [8, 32], strides = [1, 1]} : vector<8x128xf32> to vector<8x32xf32>
    %53 = arith.negf %52 : vector<8x32xf32>
    %54 = math.exp %53 : vector<8x32xf32>
    %cst_24 = arith.constant 1.000000e+00 : f32
    %55 = vector.broadcast %cst_24 : f32 to vector<8x32xf32>
    %56 = arith.addf %55, %54 : vector<8x32xf32>
    %57 = arith.divf %55, %56 : vector<8x32xf32>
    %58 = vector.extract_strided_slice %51 {offsets = [0, 32], sizes = [8, 32], strides = [1, 1]} : vector<8x128xf32> to vector<8x32xf32>
    %59 = arith.negf %58 : vector<8x32xf32>
    %60 = math.exp %59 : vector<8x32xf32>
    %cst_25 = arith.constant 1.000000e+00 : f32
    %61 = vector.broadcast %cst_25 : f32 to vector<8x32xf32>
    %62 = arith.addf %61, %60 : vector<8x32xf32>
    %63 = arith.divf %61, %62 : vector<8x32xf32>
    %64 = vector.extract_strided_slice %51 {offsets = [0, 64], sizes = [8, 32], strides = [1, 1]} : vector<8x128xf32> to vector<8x32xf32>
    %65 = math.tanh %64 : vector<8x32xf32>
    %66 = vector.extract_strided_slice %51 {offsets = [0, 96], sizes = [8, 32], strides = [1, 1]} : vector<8x128xf32> to vector<8x32xf32>
    %67 = arith.negf %66 : vector<8x32xf32>
    %68 = math.exp %67 : vector<8x32xf32>
    %cst_26 = arith.constant 1.000000e+00 : f32
    %69 = vector.broadcast %cst_26 : f32 to vector<8x32xf32>
    %70 = arith.addf %69, %68 : vector<8x32xf32>
    %71 = arith.divf %69, %70 : vector<8x32xf32>
    %72 = arith.mulf %63, %41 : vector<8x32xf32>
    %73 = arith.mulf %57, %65 : vector<8x32xf32>
    %74 = arith.addf %72, %73 : vector<8x32xf32>
    %75 = math.tanh %74 : vector<8x32xf32>
    %76 = arith.mulf %71, %75 : vector<8x32xf32>
    %77 = arith.index_cast %47 : i32 to index
    %c0_27 = arith.constant 0 : index
    %78 = vector.load %arg5[%77, %c0_27] : memref<64x32xf32, #tpu.memory_space<vmem>>, vector<8x32xf32>
    tpu.vector_store %arg5[%77, %c0_27], %76 {strides = array<i32>} : memref<64x32xf32, #tpu.memory_space<vmem>>, vector<8x32xf32>,
    %c2_i32 = arith.constant 2 : i32
    %c8_i32_28 = arith.constant 8 : i32
    %79 = arith.muli %c2_i32, %c8_i32_28 : i32
    %80 = tpu.assume_multiple %79, 8 : i32
    %81 = arith.index_cast %80 : i32 to index
    %c0_29 = arith.constant 0 : index
    %82 = vector.load %arg8[%81, %c0_29] : memref<64x128xf32, #tpu.memory_space<vmem>>, vector<8x128xf32>
    %cst_30 = arith.constant dense<0.000000e+00> : vector<8x128xf32>
    %83 = tpu.matmul %76, %10, %cst_30 {dimension_numbers = #tpu.dot_dimension_numbers<[1], [0], [0], [1], [0, 0, 1, 1], [], []>} : vector<8x32xf32>, vector<32x128xf32>, vector<8x128xf32> -> vector<8x128xf32>
    %84 = arith.addf %82, %83 : vector<8x128xf32>
    %85 = vector.extract_strided_slice %84 {offsets = [0, 0], sizes = [8, 32], strides = [1, 1]} : vector<8x128xf32> to vector<8x32xf32>
    %86 = arith.negf %85 : vector<8x32xf32>
    %87 = math.exp %86 : vector<8x32xf32>
    %cst_31 = arith.constant 1.000000e+00 : f32
    %88 = vector.broadcast %cst_31 : f32 to vector<8x32xf32>
    %89 = arith.addf %88, %87 : vector<8x32xf32>
    %90 = arith.divf %88, %89 : vector<8x32xf32>
    %91 = vector.extract_strided_slice %84 {offsets = [0, 32], sizes = [8, 32], strides = [1, 1]} : vector<8x128xf32> to vector<8x32xf32>
    %92 = arith.negf %91 : vector<8x32xf32>
    %93 = math.exp %92 : vector<8x32xf32>
    %cst_32 = arith.constant 1.000000e+00 : f32
    %94 = vector.broadcast %cst_32 : f32 to vector<8x32xf32>
    %95 = arith.addf %94, %93 : vector<8x32xf32>
    %96 = arith.divf %94, %95 : vector<8x32xf32>
    %97 = vector.extract_strided_slice %84 {offsets = [0, 64], sizes = [8, 32], strides = [1, 1]} : vector<8x128xf32> to vector<8x32xf32>
    %98 = math.tanh %97 : vector<8x32xf32>
    %99 = vector.extract_strided_slice %84 {offsets = [0, 96], sizes = [8, 32], strides = [1, 1]} : vector<8x128xf32> to vector<8x32xf32>
    %100 = arith.negf %99 : vector<8x32xf32>
    %101 = math.exp %100 : vector<8x32xf32>
    %cst_33 = arith.constant 1.000000e+00 : f32
    %102 = vector.broadcast %cst_33 : f32 to vector<8x32xf32>
    %103 = arith.addf %102, %101 : vector<8x32xf32>
    %104 = arith.divf %102, %103 : vector<8x32xf32>
    %105 = arith.mulf %96, %74 : vector<8x32xf32>
    %106 = arith.mulf %90, %98 : vector<8x32xf32>
    %107 = arith.addf %105, %106 : vector<8x32xf32>
    %108 = math.tanh %107 : vector<8x32xf32>
    %109 = arith.mulf %104, %108 : vector<8x32xf32>
    %110 = arith.index_cast %80 : i32 to index
    %c0_34 = arith.constant 0 : index
    %111 = vector.load %arg5[%110, %c0_34] : memref<64x32xf32, #tpu.memory_space<vmem>>, vector<8x32xf32>
    tpu.vector_store %arg5[%110, %c0_34], %109 {strides = array<i32>} : memref<64x32xf32, #tpu.memory_space<vmem>>, vector<8x32xf32>,
    %c3_i32 = arith.constant 3 : i32
    %c8_i32_35 = arith.constant 8 : i32
    %112 = arith.muli %c3_i32, %c8_i32_35 : i32
    %113 = tpu.assume_multiple %112, 8 : i32
    %114 = arith.index_cast %113 : i32 to index
    %c0_36 = arith.constant 0 : index
    %115 = vector.load %arg8[%114, %c0_36] : memref<64x128xf32, #tpu.memory_space<vmem>>, vector<8x128xf32>
    %cst_37 = arith.constant dense<0.000000e+00> : vector<8x128xf32>
    %116 = tpu.matmul %109, %10, %cst_37 {dimension_numbers = #tpu.dot_dimension_numbers<[1], [0], [0], [1], [0, 0, 1, 1], [], []>} : vector<8x32xf32>, vector<32x128xf32>, vector<8x128xf32> -> vector<8x128xf32>
    %117 = arith.addf %115, %116 : vector<8x128xf32>
    %118 = vector.extract_strided_slice %117 {offsets = [0, 0], sizes = [8, 32], strides = [1, 1]} : vector<8x128xf32> to vector<8x32xf32>
    %119 = arith.negf %118 : vector<8x32xf32>
    %120 = math.exp %119 : vector<8x32xf32>
    %cst_38 = arith.constant 1.000000e+00 : f32
    %121 = vector.broadcast %cst_38 : f32 to vector<8x32xf32>
    %122 = arith.addf %121, %120 : vector<8x32xf32>
    %123 = arith.divf %121, %122 : vector<8x32xf32>
    %124 = vector.extract_strided_slice %117 {offsets = [0, 32], sizes = [8, 32], strides = [1, 1]} : vector<8x128xf32> to vector<8x32xf32>
    %125 = arith.negf %124 : vector<8x32xf32>
    %126 = math.exp %125 : vector<8x32xf32>
    %cst_39 = arith.constant 1.000000e+00 : f32
    %127 = vector.broadcast %cst_39 : f32 to vector<8x32xf32>
    %128 = arith.addf %127, %126 : vector<8x32xf32>
    %129 = arith.divf %127, %128 : vector<8x32xf32>
    %130 = vector.extract_strided_slice %117 {offsets = [0, 64], sizes = [8, 32], strides = [1, 1]} : vector<8x128xf32> to vector<8x32xf32>
    %131 = math.tanh %130 : vector<8x32xf32>
    %132 = vector.extract_strided_slice %117 {offsets = [0, 96], sizes = [8, 32], strides = [1, 1]} : vector<8x128xf32> to vector<8x32xf32>
    %133 = arith.negf %132 : vector<8x32xf32>
    %134 = math.exp %133 : vector<8x32xf32>
    %cst_40 = arith.constant 1.000000e+00 : f32
    %135 = vector.broadcast %cst_40 : f32 to vector<8x32xf32>
    %136 = arith.addf %135, %134 : vector<8x32xf32>
    %137 = arith.divf %135, %136 : vector<8x32xf32>
    %138 = arith.mulf %129, %107 : vector<8x32xf32>
    %139 = arith.mulf %123, %131 : vector<8x32xf32>
    %140 = arith.addf %138, %139 : vector<8x32xf32>
    %141 = math.tanh %140 : vector<8x32xf32>
    %142 = arith.mulf %137, %141 : vector<8x32xf32>
    %143 = arith.index_cast %113 : i32 to index
    %c0_41 = arith.constant 0 : index
    %144 = vector.load %arg5[%143, %c0_41] : memref<64x32xf32, #tpu.memory_space<vmem>>, vector<8x32xf32>
    tpu.vector_store %arg5[%143, %c0_41], %142 {strides = array<i32>} : memref<64x32xf32, #tpu.memory_space<vmem>>, vector<8x32xf32>,
    %c4_i32 = arith.constant 4 : i32
    %c8_i32_42 = arith.constant 8 : i32
    %145 = arith.muli %c4_i32, %c8_i32_42 : i32
    %146 = tpu.assume_multiple %145, 8 : i32
    %147 = arith.index_cast %146 : i32 to index
    %c0_43 = arith.constant 0 : index
    %148 = vector.load %arg8[%147, %c0_43] : memref<64x128xf32, #tpu.memory_space<vmem>>, vector<8x128xf32>
    %cst_44 = arith.constant dense<0.000000e+00> : vector<8x128xf32>
    %149 = tpu.matmul %142, %10, %cst_44 {dimension_numbers = #tpu.dot_dimension_numbers<[1], [0], [0], [1], [0, 0, 1, 1], [], []>} : vector<8x32xf32>, vector<32x128xf32>, vector<8x128xf32> -> vector<8x128xf32>
    %150 = arith.addf %148, %149 : vector<8x128xf32>
    %151 = vector.extract_strided_slice %150 {offsets = [0, 0], sizes = [8, 32], strides = [1, 1]} : vector<8x128xf32> to vector<8x32xf32>
    %152 = arith.negf %151 : vector<8x32xf32>
    %153 = math.exp %152 : vector<8x32xf32>
    %cst_45 = arith.constant 1.000000e+00 : f32
    %154 = vector.broadcast %cst_45 : f32 to vector<8x32xf32>
    %155 = arith.addf %154, %153 : vector<8x32xf32>
    %156 = arith.divf %154, %155 : vector<8x32xf32>
    %157 = vector.extract_strided_slice %150 {offsets = [0, 32], sizes = [8, 32], strides = [1, 1]} : vector<8x128xf32> to vector<8x32xf32>
    %158 = arith.negf %157 : vector<8x32xf32>
    %159 = math.exp %158 : vector<8x32xf32>
    %cst_46 = arith.constant 1.000000e+00 : f32
    %160 = vector.broadcast %cst_46 : f32 to vector<8x32xf32>
    %161 = arith.addf %160, %159 : vector<8x32xf32>
    %162 = arith.divf %160, %161 : vector<8x32xf32>
    %163 = vector.extract_strided_slice %150 {offsets = [0, 64], sizes = [8, 32], strides = [1, 1]} : vector<8x128xf32> to vector<8x32xf32>
    %164 = math.tanh %163 : vector<8x32xf32>
    %165 = vector.extract_strided_slice %150 {offsets = [0, 96], sizes = [8, 32], strides = [1, 1]} : vector<8x128xf32> to vector<8x32xf32>
    %166 = arith.negf %165 : vector<8x32xf32>
    %167 = math.exp %166 : vector<8x32xf32>
    %cst_47 = arith.constant 1.000000e+00 : f32
    %168 = vector.broadcast %cst_47 : f32 to vector<8x32xf32>
    %169 = arith.addf %168, %167 : vector<8x32xf32>
    %170 = arith.divf %168, %169 : vector<8x32xf32>
    %171 = arith.mulf %162, %140 : vector<8x32xf32>
    %172 = arith.mulf %156, %164 : vector<8x32xf32>
    %173 = arith.addf %171, %172 : vector<8x32xf32>
    %174 = math.tanh %173 : vector<8x32xf32>
    %175 = arith.mulf %170, %174 : vector<8x32xf32>
    %176 = arith.index_cast %146 : i32 to index
    %c0_48 = arith.constant 0 : index
    %177 = vector.load %arg5[%176, %c0_48] : memref<64x32xf32, #tpu.memory_space<vmem>>, vector<8x32xf32>
    tpu.vector_store %arg5[%176, %c0_48], %175 {strides = array<i32>} : memref<64x32xf32, #tpu.memory_space<vmem>>, vector<8x32xf32>,
    %c5_i32 = arith.constant 5 : i32
    %c8_i32_49 = arith.constant 8 : i32
    %178 = arith.muli %c5_i32, %c8_i32_49 : i32
    %179 = tpu.assume_multiple %178, 8 : i32
    %180 = arith.index_cast %179 : i32 to index
    %c0_50 = arith.constant 0 : index
    %181 = vector.load %arg8[%180, %c0_50] : memref<64x128xf32, #tpu.memory_space<vmem>>, vector<8x128xf32>
    %cst_51 = arith.constant dense<0.000000e+00> : vector<8x128xf32>
    %182 = tpu.matmul %175, %10, %cst_51 {dimension_numbers = #tpu.dot_dimension_numbers<[1], [0], [0], [1], [0, 0, 1, 1], [], []>} : vector<8x32xf32>, vector<32x128xf32>, vector<8x128xf32> -> vector<8x128xf32>
    %183 = arith.addf %181, %182 : vector<8x128xf32>
    %184 = vector.extract_strided_slice %183 {offsets = [0, 0], sizes = [8, 32], strides = [1, 1]} : vector<8x128xf32> to vector<8x32xf32>
    %185 = arith.negf %184 : vector<8x32xf32>
    %186 = math.exp %185 : vector<8x32xf32>
    %cst_52 = arith.constant 1.000000e+00 : f32
    %187 = vector.broadcast %cst_52 : f32 to vector<8x32xf32>
    %188 = arith.addf %187, %186 : vector<8x32xf32>
    %189 = arith.divf %187, %188 : vector<8x32xf32>
    %190 = vector.extract_strided_slice %183 {offsets = [0, 32], sizes = [8, 32], strides = [1, 1]} : vector<8x128xf32> to vector<8x32xf32>
    %191 = arith.negf %190 : vector<8x32xf32>
    %192 = math.exp %191 : vector<8x32xf32>
    %cst_53 = arith.constant 1.000000e+00 : f32
    %193 = vector.broadcast %cst_53 : f32 to vector<8x32xf32>
    %194 = arith.addf %193, %192 : vector<8x32xf32>
    %195 = arith.divf %193, %194 : vector<8x32xf32>
    %196 = vector.extract_strided_slice %183 {offsets = [0, 64], sizes = [8, 32], strides = [1, 1]} : vector<8x128xf32> to vector<8x32xf32>
    %197 = math.tanh %196 : vector<8x32xf32>
    %198 = vector.extract_strided_slice %183 {offsets = [0, 96], sizes = [8, 32], strides = [1, 1]} : vector<8x128xf32> to vector<8x32xf32>
    %199 = arith.negf %198 : vector<8x32xf32>
    %200 = math.exp %199 : vector<8x32xf32>
    %cst_54 = arith.constant 1.000000e+00 : f32
    %201 = vector.broadcast %cst_54 : f32 to vector<8x32xf32>
    %202 = arith.addf %201, %200 : vector<8x32xf32>
    %203 = arith.divf %201, %202 : vector<8x32xf32>
    %204 = arith.mulf %195, %173 : vector<8x32xf32>
    %205 = arith.mulf %189, %197 : vector<8x32xf32>
    %206 = arith.addf %204, %205 : vector<8x32xf32>
    %207 = math.tanh %206 : vector<8x32xf32>
    %208 = arith.mulf %203, %207 : vector<8x32xf32>
    %209 = arith.index_cast %179 : i32 to index
    %c0_55 = arith.constant 0 : index
    %210 = vector.load %arg5[%209, %c0_55] : memref<64x32xf32, #tpu.memory_space<vmem>>, vector<8x32xf32>
    tpu.vector_store %arg5[%209, %c0_55], %208 {strides = array<i32>} : memref<64x32xf32, #tpu.memory_space<vmem>>, vector<8x32xf32>,
    %c6_i32 = arith.constant 6 : i32
    %c8_i32_56 = arith.constant 8 : i32
    %211 = arith.muli %c6_i32, %c8_i32_56 : i32
    %212 = tpu.assume_multiple %211, 8 : i32
    %213 = arith.index_cast %212 : i32 to index
    %c0_57 = arith.constant 0 : index
    %214 = vector.load %arg8[%213, %c0_57] : memref<64x128xf32, #tpu.memory_space<vmem>>, vector<8x128xf32>
    %cst_58 = arith.constant dense<0.000000e+00> : vector<8x128xf32>
    %215 = tpu.matmul %208, %10, %cst_58 {dimension_numbers = #tpu.dot_dimension_numbers<[1], [0], [0], [1], [0, 0, 1, 1], [], []>} : vector<8x32xf32>, vector<32x128xf32>, vector<8x128xf32> -> vector<8x128xf32>
    %216 = arith.addf %214, %215 : vector<8x128xf32>
    %217 = vector.extract_strided_slice %216 {offsets = [0, 0], sizes = [8, 32], strides = [1, 1]} : vector<8x128xf32> to vector<8x32xf32>
    %218 = arith.negf %217 : vector<8x32xf32>
    %219 = math.exp %218 : vector<8x32xf32>
    %cst_59 = arith.constant 1.000000e+00 : f32
    %220 = vector.broadcast %cst_59 : f32 to vector<8x32xf32>
    %221 = arith.addf %220, %219 : vector<8x32xf32>
    %222 = arith.divf %220, %221 : vector<8x32xf32>
    %223 = vector.extract_strided_slice %216 {offsets = [0, 32], sizes = [8, 32], strides = [1, 1]} : vector<8x128xf32> to vector<8x32xf32>
    %224 = arith.negf %223 : vector<8x32xf32>
    %225 = math.exp %224 : vector<8x32xf32>
    %cst_60 = arith.constant 1.000000e+00 : f32
    %226 = vector.broadcast %cst_60 : f32 to vector<8x32xf32>
    %227 = arith.addf %226, %225 : vector<8x32xf32>
    %228 = arith.divf %226, %227 : vector<8x32xf32>
    %229 = vector.extract_strided_slice %216 {offsets = [0, 64], sizes = [8, 32], strides = [1, 1]} : vector<8x128xf32> to vector<8x32xf32>
    %230 = math.tanh %229 : vector<8x32xf32>
    %231 = vector.extract_strided_slice %216 {offsets = [0, 96], sizes = [8, 32], strides = [1, 1]} : vector<8x128xf32> to vector<8x32xf32>
    %232 = arith.negf %231 : vector<8x32xf32>
    %233 = math.exp %232 : vector<8x32xf32>
    %cst_61 = arith.constant 1.000000e+00 : f32
    %234 = vector.broadcast %cst_61 : f32 to vector<8x32xf32>
    %235 = arith.addf %234, %233 : vector<8x32xf32>
    %236 = arith.divf %234, %235 : vector<8x32xf32>
    %237 = arith.mulf %228, %206 : vector<8x32xf32>
    %238 = arith.mulf %222, %230 : vector<8x32xf32>
    %239 = arith.addf %237, %238 : vector<8x32xf32>
    %240 = math.tanh %239 : vector<8x32xf32>
    %241 = arith.mulf %236, %240 : vector<8x32xf32>
    %242 = arith.index_cast %212 : i32 to index
    %c0_62 = arith.constant 0 : index
    %243 = vector.load %arg5[%242, %c0_62] : memref<64x32xf32, #tpu.memory_space<vmem>>, vector<8x32xf32>
    tpu.vector_store %arg5[%242, %c0_62], %241 {strides = array<i32>} : memref<64x32xf32, #tpu.memory_space<vmem>>, vector<8x32xf32>,
    %c7_i32 = arith.constant 7 : i32
    %c8_i32_63 = arith.constant 8 : i32
    %244 = arith.muli %c7_i32, %c8_i32_63 : i32
    %245 = tpu.assume_multiple %244, 8 : i32
    %246 = arith.index_cast %245 : i32 to index
    %c0_64 = arith.constant 0 : index
    %247 = vector.load %arg8[%246, %c0_64] : memref<64x128xf32, #tpu.memory_space<vmem>>, vector<8x128xf32>
    %cst_65 = arith.constant dense<0.000000e+00> : vector<8x128xf32>
    %248 = tpu.matmul %241, %10, %cst_65 {dimension_numbers = #tpu.dot_dimension_numbers<[1], [0], [0], [1], [0, 0, 1, 1], [], []>} : vector<8x32xf32>, vector<32x128xf32>, vector<8x128xf32> -> vector<8x128xf32>
    %249 = arith.addf %247, %248 : vector<8x128xf32>
    %250 = vector.extract_strided_slice %249 {offsets = [0, 0], sizes = [8, 32], strides = [1, 1]} : vector<8x128xf32> to vector<8x32xf32>
    %251 = arith.negf %250 : vector<8x32xf32>
    %252 = math.exp %251 : vector<8x32xf32>
    %cst_66 = arith.constant 1.000000e+00 : f32
    %253 = vector.broadcast %cst_66 : f32 to vector<8x32xf32>
    %254 = arith.addf %253, %252 : vector<8x32xf32>
    %255 = arith.divf %253, %254 : vector<8x32xf32>
    %256 = vector.extract_strided_slice %249 {offsets = [0, 32], sizes = [8, 32], strides = [1, 1]} : vector<8x128xf32> to vector<8x32xf32>
    %257 = arith.negf %256 : vector<8x32xf32>
    %258 = math.exp %257 : vector<8x32xf32>
    %cst_67 = arith.constant 1.000000e+00 : f32
    %259 = vector.broadcast %cst_67 : f32 to vector<8x32xf32>
    %260 = arith.addf %259, %258 : vector<8x32xf32>
    %261 = arith.divf %259, %260 : vector<8x32xf32>
    %262 = vector.extract_strided_slice %249 {offsets = [0, 64], sizes = [8, 32], strides = [1, 1]} : vector<8x128xf32> to vector<8x32xf32>
    %263 = math.tanh %262 : vector<8x32xf32>
    %264 = vector.extract_strided_slice %249 {offsets = [0, 96], sizes = [8, 32], strides = [1, 1]} : vector<8x128xf32> to vector<8x32xf32>
    %265 = arith.negf %264 : vector<8x32xf32>
    %266 = math.exp %265 : vector<8x32xf32>
    %cst_68 = arith.constant 1.000000e+00 : f32
    %267 = vector.broadcast %cst_68 : f32 to vector<8x32xf32>
    %268 = arith.addf %267, %266 : vector<8x32xf32>
    %269 = arith.divf %267, %268 : vector<8x32xf32>
    %270 = arith.mulf %261, %239 : vector<8x32xf32>
    %271 = arith.mulf %255, %263 : vector<8x32xf32>
    %272 = arith.addf %270, %271 : vector<8x32xf32>
    %273 = math.tanh %272 : vector<8x32xf32>
    %274 = arith.mulf %269, %273 : vector<8x32xf32>
    %275 = arith.index_cast %245 : i32 to index
    %c0_69 = arith.constant 0 : index
    %276 = vector.load %arg5[%275, %c0_69] : memref<64x32xf32, #tpu.memory_space<vmem>>, vector<8x32xf32>
    tpu.vector_store %arg5[%275, %c0_69], %274 {strides = array<i32>} : memref<64x32xf32, #tpu.memory_space<vmem>>, vector<8x32xf32>,
    %c8_i32_70 = arith.constant 8 : i32
    %c0_71 = arith.constant 0 : index
    %c0_72 = arith.constant 0 : index
    %277 = vector.load %arg6[%c0_71, %c0_72] : memref<8x32xf32, #tpu.memory_space<vmem>>, vector<8x32xf32>
    tpu.vector_store %arg6[%c0_71, %c0_72], %274 {strides = array<i32>} : memref<8x32xf32, #tpu.memory_space<vmem>>, vector<8x32xf32>,
    %c0_73 = arith.constant 0 : index
    %c0_74 = arith.constant 0 : index
    %278 = vector.load %arg7[%c0_73, %c0_74] : memref<8x32xf32, #tpu.memory_space<vmem>>, vector<8x32xf32>
    tpu.vector_store %arg7[%c0_73, %c0_74], %272 {strides = array<i32>} : memref<8x32xf32, #tpu.memory_space<vmem>>, vector<8x32xf32>,
    return
  }
  func.func @transform_0(%arg0: i32) -> (i32, i32) {
    %c0_i32 = arith.constant 0 : i32
    %c0_i32_0 = arith.constant 0 : i32
    return %arg0, %c0_i32 : i32, i32
  }
  func.func @transform_1(%arg0: i32) -> (i32, i32) {
    %c0_i32 = arith.constant 0 : i32
    %c0_i32_0 = arith.constant 0 : i32
    %c0_i32_1 = arith.constant 0 : i32
    return %c0_i32, %c0_i32_0 : i32, i32
  }
  func.func @transform_2(%arg0: i32) -> (i32, i32) {
    %c0_i32 = arith.constant 0 : i32
    %c0_i32_0 = arith.constant 0 : i32
    %c0_i32_1 = arith.constant 0 : i32
    return %c0_i32, %c0_i32_0 : i32, i32
  }
  func.func @transform_3(%arg0: i32) -> (i32, i32) {
    %c0_i32 = arith.constant 0 : i32
    %c0_i32_0 = arith.constant 0 : i32
    %c0_i32_1 = arith.constant 0 : i32
    return %c0_i32, %c0_i32_0 : i32, i32
  }
  func.func @transform_4(%arg0: i32) -> (i32, i32) {
    %c0_i32 = arith.constant 0 : i32
    %c0_i32_0 = arith.constant 0 : i32
    return %arg0, %c0_i32 : i32, i32
  }
}

module attributes {stable_mosaic.version = 11 : i64} {
  func.func @_lstm_chunk_kernel(%arg0: i32, %arg1: memref<64x16xf32, #tpu.memory_space<vmem>>, %arg2: memref<16x128xf32, #tpu.memory_space<vmem>>, %arg3: memref<32x128xf32, #tpu.memory_space<vmem>>, %arg4: memref<1x128xf32, #tpu.memory_space<vmem>>, %arg5: memref<64x32xf32, #tpu.memory_space<vmem>>, %arg6: memref<8x32xf32, #tpu.memory_space<vmem>>, %arg7: memref<8x32xf32, #tpu.memory_space<vmem>>, %arg8: memref<64x128xf32, #tpu.memory_space<vmem>>) attributes {dimension_semantics = [#tpu.dimension_semantics<arbitrary>], iteration_bounds = array<i64: 1>, scalar_prefetch = 0 : i64, scratch_operands = 3 : i64, tpu.core_type = #tpu.core_type<tc>, window_params = [{transform_indices = @transform_0, window_bounds = array<i64: 64, 16>}, {pipeline_mode = #tpu.pipeline_mode<synchronous>, transform_indices = @transform_1, window_bounds = array<i64: 16, 128>}, {pipeline_mode = #tpu.pipeline_mode<synchronous>, transform_indices = @transform_2, window_bounds = array<i64: 32, 128>}, {pipeline_mode = #tpu.pipeline_mode<synchronous>, transform_indices = @transform_3, window_bounds = array<i64: 1, 128>}, {transform_indices = @transform_4, window_bounds = array<i64: 64, 32>}]} {
    %c0_i32 = arith.constant 0 : i32
    %0 = arith.cmpi eq, %arg0, %c0_i32 : i32
    %1 = arith.extui %0 : i1 to i32
    %c0_i32_0 = arith.constant 0 : i32
    %2 = arith.cmpi ne, %1, %c0_i32_0 : i32
    scf.if %2 {
      %cst_75 = arith.constant 0.000000e+00 : f32
      %279 = vector.broadcast %cst_75 : f32 to vector<8x32xf32>
      %c0_76 = arith.constant 0 : index
      %c0_77 = arith.constant 0 : index
      %280 = vector.load %arg6[%c0_76, %c0_77] : memref<8x32xf32, #tpu.memory_space<vmem>>, vector<8x32xf32>
      tpu.vector_store %arg6[%c0_76, %c0_77], %279 {strides = array<i32>} : memref<8x32xf32, #tpu.memory_space<vmem>>, vector<8x32xf32>,
      %cst_78 = arith.constant 0.000000e+00 : f32
      %281 = vector.broadcast %cst_78 : f32 to vector<8x32xf32>
      %c0_79 = arith.constant 0 : index
      %c0_80 = arith.constant 0 : index
      %282 = vector.load %arg7[%c0_79, %c0_80] : memref<8x32xf32, #tpu.memory_space<vmem>>, vector<8x32xf32>
      tpu.vector_store %arg7[%c0_79, %c0_80], %281 {strides = array<i32>} : memref<8x32xf32, #tpu.memory_space<vmem>>, vector<8x32xf32>,
    } else {
    }
    %c0 = arith.constant 0 : index
    %c0_1 = arith.constant 0 : index
    %3 = vector.load %arg1[%c0, %c0_1] : memref<64x16xf32, #tpu.memory_space<vmem>>, vector<64x16xf32>
    %c0_2 = arith.constant 0 : index
    %c0_3 = arith.constant 0 : index
    %4 = vector.load %arg2[%c0_2, %c0_3] : memref<16x128xf32, #tpu.memory_space<vmem>>, vector<16x128xf32>
    %cst = arith.constant dense<0.000000e+00> : vector<64x128xf32>
    %5 = tpu.matmul %3, %4, %cst {dimension_numbers = #tpu.dot_dimension_numbers<[1], [0], [0], [1], [0, 0, 1, 1], [], []>} : vector<64x16xf32>, vector<16x128xf32>, vector<64x128xf32> -> vector<64x128xf32>
    %c0_4 = arith.constant 0 : index
    %c0_5 = arith.constant 0 : index
    %6 = vector.load %arg4[%c0_4, %c0_5] : memref<1x128xf32, #tpu.memory_space<vmem>>, vector<1x128xf32>
    %7 = vector.broadcast %6 : vector<1x128xf32> to vector<64x128xf32>
    %8 = arith.addf %5, %7 : vector<64x128xf32>
    %c0_6 = arith.constant 0 : index
    %c0_7 = arith.constant 0 : index
    %9 = vector.load %arg8[%c0_6, %c0_7] : memref<64x128xf32, #tpu.memory_space<vmem>>, vector<64x128xf32>
    tpu.vector_store %arg8[%c0_6, %c0_7], %8 {strides = array<i32>} : memref<64x128xf32, #tpu.memory_space<vmem>>, vector<64x128xf32>,
    %c0_8 = arith.constant 0 : index
    %c0_9 = arith.constant 0 : index
    %10 = vector.load %arg3[%c0_8, %c0_9] : memref<32x128xf32, #tpu.memory_space<vmem>>, vector<32x128xf32>
    %c0_10 = arith.constant 0 : index
    %c0_11 = arith.constant 0 : index
    %11 = vector.load %arg6[%c0_10, %c0_11] : memref<8x32xf32, #tpu.memory_space<vmem>>, vector<8x32xf32>
    %c0_12 = arith.constant 0 : index
    %c0_13 = arith.constant 0 : index
    %12 = vector.load %arg7[%c0_12, %c0_13] : memref<8x32xf32, #tpu.memory_space<vmem>>, vector<8x32xf32>
    %c0_i32_14 = arith.constant 0 : i32
    %c8_i32 = arith.constant 8 : i32
    %13 = arith.muli %c0_i32_14, %c8_i32 : i32
    %14 = tpu.assume_multiple %13, 8 : i32
    %15 = arith.index_cast %14 : i32 to index
    %c0_15 = arith.constant 0 : index
    %16 = vector.load %arg8[%15, %c0_15] : memref<64x128xf32, #tpu.memory_space<vmem>>, vector<8x128xf32>
    %cst_16 = arith.constant dense<0.000000e+00> : vector<8x128xf32>
    %17 = tpu.matmul %11, %10, %cst_16 {dimension_numbers = #tpu.dot_dimension_numbers<[1], [0], [0], [1], [0, 0, 1, 1], [], []>} : vector<8x32xf32>, vector<32x128xf32>, vector<8x128xf32> -> vector<8x128xf32>
    %18 = arith.addf %16, %17 : vector<8x128xf32>
    %19 = vector.extract_strided_slice %18 {offsets = [0, 0], sizes = [8, 32], strides = [1, 1]} : vector<8x128xf32> to vector<8x32xf32>
    %20 = arith.negf %19 : vector<8x32xf32>
    %21 = math.exp %20 : vector<8x32xf32>
    %cst_17 = arith.constant 1.000000e+00 : f32
    %22 = vector.broadcast %cst_17 : f32 to vector<8x32xf32>
    %23 = arith.addf %22, %21 : vector<8x32xf32>
    %24 = arith.divf %22, %23 : vector<8x32xf32>
    %25 = vector.extract_strided_slice %18 {offsets = [0, 32], sizes = [8, 32], strides = [1, 1]} : vector<8x128xf32> to vector<8x32xf32>
    %26 = arith.negf %25 : vector<8x32xf32>
    %27 = math.exp %26 : vector<8x32xf32>
    %cst_18 = arith.constant 1.000000e+00 : f32
    %28 = vector.broadcast %cst_18 : f32 to vector<8x32xf32>
    %29 = arith.addf %28, %27 : vector<8x32xf32>
    %30 = arith.divf %28, %29 : vector<8x32xf32>
    %31 = vector.extract_strided_slice %18 {offsets = [0, 64], sizes = [8, 32], strides = [1, 1]} : vector<8x128xf32> to vector<8x32xf32>
    %32 = math.tanh %31 : vector<8x32xf32>
    %33 = vector.extract_strided_slice %18 {offsets = [0, 96], sizes = [8, 32], strides = [1, 1]} : vector<8x128xf32> to vector<8x32xf32>
    %34 = arith.negf %33 : vector<8x32xf32>
    %35 = math.exp %34 : vector<8x32xf32>
    %cst_19 = arith.constant 1.000000e+00 : f32
    %36 = vector.broadcast %cst_19 : f32 to vector<8x32xf32>
    %37 = arith.addf %36, %35 : vector<8x32xf32>
    %38 = arith.divf %36, %37 : vector<8x32xf32>
    %39 = arith.mulf %30, %12 : vector<8x32xf32>
    %40 = arith.mulf %24, %32 : vector<8x32xf32>
    %41 = arith.addf %39, %40 : vector<8x32xf32>
    %42 = math.tanh %41 : vector<8x32xf32>
    %43 = arith.mulf %38, %42 : vector<8x32xf32>
    %44 = arith.index_cast %14 : i32 to index
    %c0_20 = arith.constant 0 : index
    %45 = vector.load %arg5[%44, %c0_20] : memref<64x32xf32, #tpu.memory_space<vmem>>, vector<8x32xf32>
    tpu.vector_store %arg5[%44, %c0_20], %43 {strides = array<i32>} : memref<64x32xf32, #tpu.memory_space<vmem>>, vector<8x32xf32>,
    %c1_i32 = arith.constant 1 : i32
    %c8_i32_21 = arith.constant 8 : i32
    %46 = arith.muli %c1_i32, %c8_i32_21 : i32
    %47 = tpu.assume_multiple %46, 8 : i32
    %48 = arith.index_cast %47 : i32 to index
    %c0_22 = arith.constant 0 : index
    %49 = vector.load %arg8[%48, %c0_22] : memref<64x128xf32, #tpu.memory_space<vmem>>, vector<8x128xf32>
    %cst_23 = arith.constant dense<0.000000e+00> : vector<8x128xf32>
    %50 = tpu.matmul %43, %10, %cst_23 {dimension_numbers = #tpu.dot_dimension_numbers<[1], [0], [0], [1], [0, 0, 1, 1], [], []>} : vector<8x32xf32>, vector<32x128xf32>, vector<8x128xf32> -> vector<8x128xf32>
    %51 = arith.addf %49, %50 : vector<8x128xf32>
    %52 = vector.extract_strided_slice %51 {offsets = [0, 0], sizes = [8, 32], strides = [1, 1]} : vector<8x128xf32> to vector<8x32xf32>
    %53 = arith.negf %52 : vector<8x32xf32>
    %54 = math.exp %53 : vector<8x32xf32>
    %cst_24 = arith.constant 1.000000e+00 : f32
    %55 = vector.broadcast %cst_24 : f32 to vector<8x32xf32>
    %56 = arith.addf %55, %54 : vector<8x32xf32>
    %57 = arith.divf %55, %56 : vector<8x32xf32>
    %58 = vector.extract_strided_slice %51 {offsets = [0, 32], sizes = [8, 32], strides = [1, 1]} : vector<8x128xf32> to vector<8x32xf32>
    %59 = arith.negf %58 : vector<8x32xf32>
    %60 = math.exp %59 : vector<8x32xf32>
    %cst_25 = arith.constant 1.000000e+00 : f32
    %61 = vector.broadcast %cst_25 : f32 to vector<8x32xf32>
    %62 = arith.addf %61, %60 : vector<8x32xf32>
    %63 = arith.divf %61, %62 : vector<8x32xf32>
    %64 = vector.extract_strided_slice %51 {offsets = [0, 64], sizes = [8, 32], strides = [1, 1]} : vector<8x128xf32> to vector<8x32xf32>
    %65 = math.tanh %64 : vector<8x32xf32>
    %66 = vector.extract_strided_slice %51 {offsets = [0, 96], sizes = [8, 32], strides = [1, 1]} : vector<8x128xf32> to vector<8x32xf32>
    %67 = arith.negf %66 : vector<8x32xf32>
    %68 = math.exp %67 : vector<8x32xf32>
    %cst_26 = arith.constant 1.000000e+00 : f32
    %69 = vector.broadcast %cst_26 : f32 to vector<8x32xf32>
    %70 = arith.addf %69, %68 : vector<8x32xf32>
    %71 = arith.divf %69, %70 : vector<8x32xf32>
    %72 = arith.mulf %63, %41 : vector<8x32xf32>
    %73 = arith.mulf %57, %65 : vector<8x32xf32>
    %74 = arith.addf %72, %73 : vector<8x32xf32>
    %75 = math.tanh %74 : vector<8x32xf32>
    %76 = arith.mulf %71, %75 : vector<8x32xf32>
    %77 = arith.index_cast %47 : i32 to index
    %c0_27 = arith.constant 0 : index
    %78 = vector.load %arg5[%77, %c0_27] : memref<64x32xf32, #tpu.memory_space<vmem>>, vector<8x32xf32>
    tpu.vector_store %arg5[%77, %c0_27], %76 {strides = array<i32>} : memref<64x32xf32, #tpu.memory_space<vmem>>, vector<8x32xf32>,
    %c2_i32 = arith.constant 2 : i32
    %c8_i32_28 = arith.constant 8 : i32
    %79 = arith.muli %c2_i32, %c8_i32_28 : i32
    %80 = tpu.assume_multiple %79, 8 : i32
    %81 = arith.index_cast %80 : i32 to index
    %c0_29 = arith.constant 0 : index
    %82 = vector.load %arg8[%81, %c0_29] : memref<64x128xf32, #tpu.memory_space<vmem>>, vector<8x128xf32>
    %cst_30 = arith.constant dense<0.000000e+00> : vector<8x128xf32>
    %83 = tpu.matmul %76, %10, %cst_30 {dimension_numbers = #tpu.dot_dimension_numbers<[1], [0], [0], [1], [0, 0, 1, 1], [], []>} : vector<8x32xf32>, vector<32x128xf32>, vector<8x128xf32> -> vector<8x128xf32>
    %84 = arith.addf %82, %83 : vector<8x128xf32>
    %85 = vector.extract_strided_slice %84 {offsets = [0, 0], sizes = [8, 32], strides = [1, 1]} : vector<8x128xf32> to vector<8x32xf32>
    %86 = arith.negf %85 : vector<8x32xf32>
    %87 = math.exp %86 : vector<8x32xf32>
    %cst_31 = arith.constant 1.000000e+00 : f32
    %88 = vector.broadcast %cst_31 : f32 to vector<8x32xf32>
    %89 = arith.addf %88, %87 : vector<8x32xf32>
    %90 = arith.divf %88, %89 : vector<8x32xf32>
    %91 = vector.extract_strided_slice %84 {offsets = [0, 32], sizes = [8, 32], strides = [1, 1]} : vector<8x128xf32> to vector<8x32xf32>
    %92 = arith.negf %91 : vector<8x32xf32>
    %93 = math.exp %92 : vector<8x32xf32>
    %cst_32 = arith.constant 1.000000e+00 : f32
    %94 = vector.broadcast %cst_32 : f32 to vector<8x32xf32>
    %95 = arith.addf %94, %93 : vector<8x32xf32>
    %96 = arith.divf %94, %95 : vector<8x32xf32>
    %97 = vector.extract_strided_slice %84 {offsets = [0, 64], sizes = [8, 32], strides = [1, 1]} : vector<8x128xf32> to vector<8x32xf32>
    %98 = math.tanh %97 : vector<8x32xf32>
    %99 = vector.extract_strided_slice %84 {offsets = [0, 96], sizes = [8, 32], strides = [1, 1]} : vector<8x128xf32> to vector<8x32xf32>
    %100 = arith.negf %99 : vector<8x32xf32>
    %101 = math.exp %100 : vector<8x32xf32>
    %cst_33 = arith.constant 1.000000e+00 : f32
    %102 = vector.broadcast %cst_33 : f32 to vector<8x32xf32>
    %103 = arith.addf %102, %101 : vector<8x32xf32>
    %104 = arith.divf %102, %103 : vector<8x32xf32>
    %105 = arith.mulf %96, %74 : vector<8x32xf32>
    %106 = arith.mulf %90, %98 : vector<8x32xf32>
    %107 = arith.addf %105, %106 : vector<8x32xf32>
    %108 = math.tanh %107 : vector<8x32xf32>
    %109 = arith.mulf %104, %108 : vector<8x32xf32>
    %110 = arith.index_cast %80 : i32 to index
    %c0_34 = arith.constant 0 : index
    %111 = vector.load %arg5[%110, %c0_34] : memref<64x32xf32, #tpu.memory_space<vmem>>, vector<8x32xf32>
    tpu.vector_store %arg5[%110, %c0_34], %109 {strides = array<i32>} : memref<64x32xf32, #tpu.memory_space<vmem>>, vector<8x32xf32>,
    %c3_i32 = arith.constant 3 : i32
    %c8_i32_35 = arith.constant 8 : i32
    %112 = arith.muli %c3_i32, %c8_i32_35 : i32
    %113 = tpu.assume_multiple %112, 8 : i32
    %114 = arith.index_cast %113 : i32 to index
    %c0_36 = arith.constant 0 : index
    %115 = vector.load %arg8[%114, %c0_36] : memref<64x128xf32, #tpu.memory_space<vmem>>, vector<8x128xf32>
    %cst_37 = arith.constant dense<0.000000e+00> : vector<8x128xf32>
    %116 = tpu.matmul %109, %10, %cst_37 {dimension_numbers = #tpu.dot_dimension_numbers<[1], [0], [0], [1], [0, 0, 1, 1], [], []>} : vector<8x32xf32>, vector<32x128xf32>, vector<8x128xf32> -> vector<8x128xf32>
    %117 = arith.addf %115, %116 : vector<8x128xf32>
    %118 = vector.extract_strided_slice %117 {offsets = [0, 0], sizes = [8, 32], strides = [1, 1]} : vector<8x128xf32> to vector<8x32xf32>
    %119 = arith.negf %118 : vector<8x32xf32>
    %120 = math.exp %119 : vector<8x32xf32>
    %cst_38 = arith.constant 1.000000e+00 : f32
    %121 = vector.broadcast %cst_38 : f32 to vector<8x32xf32>
    %122 = arith.addf %121, %120 : vector<8x32xf32>
    %123 = arith.divf %121, %122 : vector<8x32xf32>
    %124 = vector.extract_strided_slice %117 {offsets = [0, 32], sizes = [8, 32], strides = [1, 1]} : vector<8x128xf32> to vector<8x32xf32>
    %125 = arith.negf %124 : vector<8x32xf32>
    %126 = math.exp %125 : vector<8x32xf32>
    %cst_39 = arith.constant 1.000000e+00 : f32
    %127 = vector.broadcast %cst_39 : f32 to vector<8x32xf32>
    %128 = arith.addf %127, %126 : vector<8x32xf32>
    %129 = arith.divf %127, %128 : vector<8x32xf32>
    %130 = vector.extract_strided_slice %117 {offsets = [0, 64], sizes = [8, 32], strides = [1, 1]} : vector<8x128xf32> to vector<8x32xf32>
    %131 = math.tanh %130 : vector<8x32xf32>
    %132 = vector.extract_strided_slice %117 {offsets = [0, 96], sizes = [8, 32], strides = [1, 1]} : vector<8x128xf32> to vector<8x32xf32>
    %133 = arith.negf %132 : vector<8x32xf32>
    %134 = math.exp %133 : vector<8x32xf32>
    %cst_40 = arith.constant 1.000000e+00 : f32
    %135 = vector.broadcast %cst_40 : f32 to vector<8x32xf32>
    %136 = arith.addf %135, %134 : vector<8x32xf32>
    %137 = arith.divf %135, %136 : vector<8x32xf32>
    %138 = arith.mulf %129, %107 : vector<8x32xf32>
    %139 = arith.mulf %123, %131 : vector<8x32xf32>
    %140 = arith.addf %138, %139 : vector<8x32xf32>
    %141 = math.tanh %140 : vector<8x32xf32>
    %142 = arith.mulf %137, %141 : vector<8x32xf32>
    %143 = arith.index_cast %113 : i32 to index
    %c0_41 = arith.constant 0 : index
    %144 = vector.load %arg5[%143, %c0_41] : memref<64x32xf32, #tpu.memory_space<vmem>>, vector<8x32xf32>
    tpu.vector_store %arg5[%143, %c0_41], %142 {strides = array<i32>} : memref<64x32xf32, #tpu.memory_space<vmem>>, vector<8x32xf32>,
    %c4_i32 = arith.constant 4 : i32
    %c8_i32_42 = arith.constant 8 : i32
    %145 = arith.muli %c4_i32, %c8_i32_42 : i32
    %146 = tpu.assume_multiple %145, 8 : i32
    %147 = arith.index_cast %146 : i32 to index
    %c0_43 = arith.constant 0 : index
    %148 = vector.load %arg8[%147, %c0_43] : memref<64x128xf32, #tpu.memory_space<vmem>>, vector<8x128xf32>
    %cst_44 = arith.constant dense<0.000000e+00> : vector<8x128xf32>
    %149 = tpu.matmul %142, %10, %cst_44 {dimension_numbers = #tpu.dot_dimension_numbers<[1], [0], [0], [1], [0, 0, 1, 1], [], []>} : vector<8x32xf32>, vector<32x128xf32>, vector<8x128xf32> -> vector<8x128xf32>
    %150 = arith.addf %148, %149 : vector<8x128xf32>
    %151 = vector.extract_strided_slice %150 {offsets = [0, 0], sizes = [8, 32], strides = [1, 1]} : vector<8x128xf32> to vector<8x32xf32>
    %152 = arith.negf %151 : vector<8x32xf32>
    %153 = math.exp %152 : vector<8x32xf32>
    %cst_45 = arith.constant 1.000000e+00 : f32
    %154 = vector.broadcast %cst_45 : f32 to vector<8x32xf32>
    %155 = arith.addf %154, %153 : vector<8x32xf32>
    %156 = arith.divf %154, %155 : vector<8x32xf32>
    %157 = vector.extract_strided_slice %150 {offsets = [0, 32], sizes = [8, 32], strides = [1, 1]} : vector<8x128xf32> to vector<8x32xf32>
    %158 = arith.negf %157 : vector<8x32xf32>
    %159 = math.exp %158 : vector<8x32xf32>
    %cst_46 = arith.constant 1.000000e+00 : f32
    %160 = vector.broadcast %cst_46 : f32 to vector<8x32xf32>
    %161 = arith.addf %160, %159 : vector<8x32xf32>
    %162 = arith.divf %160, %161 : vector<8x32xf32>
    %163 = vector.extract_strided_slice %150 {offsets = [0, 64], sizes = [8, 32], strides = [1, 1]} : vector<8x128xf32> to vector<8x32xf32>
    %164 = math.tanh %163 : vector<8x32xf32>
    %165 = vector.extract_strided_slice %150 {offsets = [0, 96], sizes = [8, 32], strides = [1, 1]} : vector<8x128xf32> to vector<8x32xf32>
    %166 = arith.negf %165 : vector<8x32xf32>
    %167 = math.exp %166 : vector<8x32xf32>
    %cst_47 = arith.constant 1.000000e+00 : f32
    %168 = vector.broadcast %cst_47 : f32 to vector<8x32xf32>
    %169 = arith.addf %168, %167 : vector<8x32xf32>
    %170 = arith.divf %168, %169 : vector<8x32xf32>
    %171 = arith.mulf %162, %140 : vector<8x32xf32>
    %172 = arith.mulf %156, %164 : vector<8x32xf32>
    %173 = arith.addf %171, %172 : vector<8x32xf32>
    %174 = math.tanh %173 : vector<8x32xf32>
    %175 = arith.mulf %170, %174 : vector<8x32xf32>
    %176 = arith.index_cast %146 : i32 to index
    %c0_48 = arith.constant 0 : index
    %177 = vector.load %arg5[%176, %c0_48] : memref<64x32xf32, #tpu.memory_space<vmem>>, vector<8x32xf32>
    tpu.vector_store %arg5[%176, %c0_48], %175 {strides = array<i32>} : memref<64x32xf32, #tpu.memory_space<vmem>>, vector<8x32xf32>,
    %c5_i32 = arith.constant 5 : i32
    %c8_i32_49 = arith.constant 8 : i32
    %178 = arith.muli %c5_i32, %c8_i32_49 : i32
    %179 = tpu.assume_multiple %178, 8 : i32
    %180 = arith.index_cast %179 : i32 to index
    %c0_50 = arith.constant 0 : index
    %181 = vector.load %arg8[%180, %c0_50] : memref<64x128xf32, #tpu.memory_space<vmem>>, vector<8x128xf32>
    %cst_51 = arith.constant dense<0.000000e+00> : vector<8x128xf32>
    %182 = tpu.matmul %175, %10, %cst_51 {dimension_numbers = #tpu.dot_dimension_numbers<[1], [0], [0], [1], [0, 0, 1, 1], [], []>} : vector<8x32xf32>, vector<32x128xf32>, vector<8x128xf32> -> vector<8x128xf32>
    %183 = arith.addf %181, %182 : vector<8x128xf32>
    %184 = vector.extract_strided_slice %183 {offsets = [0, 0], sizes = [8, 32], strides = [1, 1]} : vector<8x128xf32> to vector<8x32xf32>
    %185 = arith.negf %184 : vector<8x32xf32>
    %186 = math.exp %185 : vector<8x32xf32>
    %cst_52 = arith.constant 1.000000e+00 : f32
    %187 = vector.broadcast %cst_52 : f32 to vector<8x32xf32>
    %188 = arith.addf %187, %186 : vector<8x32xf32>
    %189 = arith.divf %187, %188 : vector<8x32xf32>
    %190 = vector.extract_strided_slice %183 {offsets = [0, 32], sizes = [8, 32], strides = [1, 1]} : vector<8x128xf32> to vector<8x32xf32>
    %191 = arith.negf %190 : vector<8x32xf32>
    %192 = math.exp %191 : vector<8x32xf32>
    %cst_53 = arith.constant 1.000000e+00 : f32
    %193 = vector.broadcast %cst_53 : f32 to vector<8x32xf32>
    %194 = arith.addf %193, %192 : vector<8x32xf32>
    %195 = arith.divf %193, %194 : vector<8x32xf32>
    %196 = vector.extract_strided_slice %183 {offsets = [0, 64], sizes = [8, 32], strides = [1, 1]} : vector<8x128xf32> to vector<8x32xf32>
    %197 = math.tanh %196 : vector<8x32xf32>
    %198 = vector.extract_strided_slice %183 {offsets = [0, 96], sizes = [8, 32], strides = [1, 1]} : vector<8x128xf32> to vector<8x32xf32>
    %199 = arith.negf %198 : vector<8x32xf32>
    %200 = math.exp %199 : vector<8x32xf32>
    %cst_54 = arith.constant 1.000000e+00 : f32
    %201 = vector.broadcast %cst_54 : f32 to vector<8x32xf32>
    %202 = arith.addf %201, %200 : vector<8x32xf32>
    %203 = arith.divf %201, %202 : vector<8x32xf32>
    %204 = arith.mulf %195, %173 : vector<8x32xf32>
    %205 = arith.mulf %189, %197 : vector<8x32xf32>
    %206 = arith.addf %204, %205 : vector<8x32xf32>
    %207 = math.tanh %206 : vector<8x32xf32>
    %208 = arith.mulf %203, %207 : vector<8x32xf32>
    %209 = arith.index_cast %179 : i32 to index
    %c0_55 = arith.constant 0 : index
    %210 = vector.load %arg5[%209, %c0_55] : memref<64x32xf32, #tpu.memory_space<vmem>>, vector<8x32xf32>
    tpu.vector_store %arg5[%209, %c0_55], %208 {strides = array<i32>} : memref<64x32xf32, #tpu.memory_space<vmem>>, vector<8x32xf32>,
    %c6_i32 = arith.constant 6 : i32
    %c8_i32_56 = arith.constant 8 : i32
    %211 = arith.muli %c6_i32, %c8_i32_56 : i32
    %212 = tpu.assume_multiple %211, 8 : i32
    %213 = arith.index_cast %212 : i32 to index
    %c0_57 = arith.constant 0 : index
    %214 = vector.load %arg8[%213, %c0_57] : memref<64x128xf32, #tpu.memory_space<vmem>>, vector<8x128xf32>
    %cst_58 = arith.constant dense<0.000000e+00> : vector<8x128xf32>
    %215 = tpu.matmul %208, %10, %cst_58 {dimension_numbers = #tpu.dot_dimension_numbers<[1], [0], [0], [1], [0, 0, 1, 1], [], []>} : vector<8x32xf32>, vector<32x128xf32>, vector<8x128xf32> -> vector<8x128xf32>
    %216 = arith.addf %214, %215 : vector<8x128xf32>
    %217 = vector.extract_strided_slice %216 {offsets = [0, 0], sizes = [8, 32], strides = [1, 1]} : vector<8x128xf32> to vector<8x32xf32>
    %218 = arith.negf %217 : vector<8x32xf32>
    %219 = math.exp %218 : vector<8x32xf32>
    %cst_59 = arith.constant 1.000000e+00 : f32
    %220 = vector.broadcast %cst_59 : f32 to vector<8x32xf32>
    %221 = arith.addf %220, %219 : vector<8x32xf32>
    %222 = arith.divf %220, %221 : vector<8x32xf32>
    %223 = vector.extract_strided_slice %216 {offsets = [0, 32], sizes = [8, 32], strides = [1, 1]} : vector<8x128xf32> to vector<8x32xf32>
    %224 = arith.negf %223 : vector<8x32xf32>
    %225 = math.exp %224 : vector<8x32xf32>
    %cst_60 = arith.constant 1.000000e+00 : f32
    %226 = vector.broadcast %cst_60 : f32 to vector<8x32xf32>
    %227 = arith.addf %226, %225 : vector<8x32xf32>
    %228 = arith.divf %226, %227 : vector<8x32xf32>
    %229 = vector.extract_strided_slice %216 {offsets = [0, 64], sizes = [8, 32], strides = [1, 1]} : vector<8x128xf32> to vector<8x32xf32>
    %230 = math.tanh %229 : vector<8x32xf32>
    %231 = vector.extract_strided_slice %216 {offsets = [0, 96], sizes = [8, 32], strides = [1, 1]} : vector<8x128xf32> to vector<8x32xf32>
    %232 = arith.negf %231 : vector<8x32xf32>
    %233 = math.exp %232 : vector<8x32xf32>
    %cst_61 = arith.constant 1.000000e+00 : f32
    %234 = vector.broadcast %cst_61 : f32 to vector<8x32xf32>
    %235 = arith.addf %234, %233 : vector<8x32xf32>
    %236 = arith.divf %234, %235 : vector<8x32xf32>
    %237 = arith.mulf %228, %206 : vector<8x32xf32>
    %238 = arith.mulf %222, %230 : vector<8x32xf32>
    %239 = arith.addf %237, %238 : vector<8x32xf32>
    %240 = math.tanh %239 : vector<8x32xf32>
    %241 = arith.mulf %236, %240 : vector<8x32xf32>
    %242 = arith.index_cast %212 : i32 to index
    %c0_62 = arith.constant 0 : index
    %243 = vector.load %arg5[%242, %c0_62] : memref<64x32xf32, #tpu.memory_space<vmem>>, vector<8x32xf32>
    tpu.vector_store %arg5[%242, %c0_62], %241 {strides = array<i32>} : memref<64x32xf32, #tpu.memory_space<vmem>>, vector<8x32xf32>,
    %c7_i32 = arith.constant 7 : i32
    %c8_i32_63 = arith.constant 8 : i32
    %244 = arith.muli %c7_i32, %c8_i32_63 : i32
    %245 = tpu.assume_multiple %244, 8 : i32
    %246 = arith.index_cast %245 : i32 to index
    %c0_64 = arith.constant 0 : index
    %247 = vector.load %arg8[%246, %c0_64] : memref<64x128xf32, #tpu.memory_space<vmem>>, vector<8x128xf32>
    %cst_65 = arith.constant dense<0.000000e+00> : vector<8x128xf32>
    %248 = tpu.matmul %241, %10, %cst_65 {dimension_numbers = #tpu.dot_dimension_numbers<[1], [0], [0], [1], [0, 0, 1, 1], [], []>} : vector<8x32xf32>, vector<32x128xf32>, vector<8x128xf32> -> vector<8x128xf32>
    %249 = arith.addf %247, %248 : vector<8x128xf32>
    %250 = vector.extract_strided_slice %249 {offsets = [0, 0], sizes = [8, 32], strides = [1, 1]} : vector<8x128xf32> to vector<8x32xf32>
    %251 = arith.negf %250 : vector<8x32xf32>
    %252 = math.exp %251 : vector<8x32xf32>
    %cst_66 = arith.constant 1.000000e+00 : f32
    %253 = vector.broadcast %cst_66 : f32 to vector<8x32xf32>
    %254 = arith.addf %253, %252 : vector<8x32xf32>
    %255 = arith.divf %253, %254 : vector<8x32xf32>
    %256 = vector.extract_strided_slice %249 {offsets = [0, 32], sizes = [8, 32], strides = [1, 1]} : vector<8x128xf32> to vector<8x32xf32>
    %257 = arith.negf %256 : vector<8x32xf32>
    %258 = math.exp %257 : vector<8x32xf32>
    %cst_67 = arith.constant 1.000000e+00 : f32
    %259 = vector.broadcast %cst_67 : f32 to vector<8x32xf32>
    %260 = arith.addf %259, %258 : vector<8x32xf32>
    %261 = arith.divf %259, %260 : vector<8x32xf32>
    %262 = vector.extract_strided_slice %249 {offsets = [0, 64], sizes = [8, 32], strides = [1, 1]} : vector<8x128xf32> to vector<8x32xf32>
    %263 = math.tanh %262 : vector<8x32xf32>
    %264 = vector.extract_strided_slice %249 {offsets = [0, 96], sizes = [8, 32], strides = [1, 1]} : vector<8x128xf32> to vector<8x32xf32>
    %265 = arith.negf %264 : vector<8x32xf32>
    %266 = math.exp %265 : vector<8x32xf32>
    %cst_68 = arith.constant 1.000000e+00 : f32
    %267 = vector.broadcast %cst_68 : f32 to vector<8x32xf32>
    %268 = arith.addf %267, %266 : vector<8x32xf32>
    %269 = arith.divf %267, %268 : vector<8x32xf32>
    %270 = arith.mulf %261, %239 : vector<8x32xf32>
    %271 = arith.mulf %255, %263 : vector<8x32xf32>
    %272 = arith.addf %270, %271 : vector<8x32xf32>
    %273 = math.tanh %272 : vector<8x32xf32>
    %274 = arith.mulf %269, %273 : vector<8x32xf32>
    %275 = arith.index_cast %245 : i32 to index
    %c0_69 = arith.constant 0 : index
    %276 = vector.load %arg5[%275, %c0_69] : memref<64x32xf32, #tpu.memory_space<vmem>>, vector<8x32xf32>
    tpu.vector_store %arg5[%275, %c0_69], %274 {strides = array<i32>} : memref<64x32xf32, #tpu.memory_space<vmem>>, vector<8x32xf32>,
    %c8_i32_70 = arith.constant 8 : i32
    %c0_71 = arith.constant 0 : index
    %c0_72 = arith.constant 0 : index
    %277 = vector.load %arg6[%c0_71, %c0_72] : memref<8x32xf32, #tpu.memory_space<vmem>>, vector<8x32xf32>
    tpu.vector_store %arg6[%c0_71, %c0_72], %274 {strides = array<i32>} : memref<8x32xf32, #tpu.memory_space<vmem>>, vector<8x32xf32>,
    %c0_73 = arith.constant 0 : index
    %c0_74 = arith.constant 0 : index
    %278 = vector.load %arg7[%c0_73, %c0_74] : memref<8x32xf32, #tpu.memory_space<vmem>>, vector<8x32xf32>
    tpu.vector_store %arg7[%c0_73, %c0_74], %272 {strides = array<i32>} : memref<8x32xf32, #tpu.memory_space<vmem>>, vector<8x32xf32>,
    return
  }
  func.func @transform_0(%arg0: i32) -> (i32, i32) {
    %c0_i32 = arith.constant 0 : i32
    %c0_i32_0 = arith.constant 0 : i32
    return %arg0, %c0_i32 : i32, i32
  }
  func.func @transform_1(%arg0: i32) -> (i32, i32) {
    %c0_i32 = arith.constant 0 : i32
    %c0_i32_0 = arith.constant 0 : i32
    %c0_i32_1 = arith.constant 0 : i32
    return %c0_i32, %c0_i32_0 : i32, i32
  }
  func.func @transform_2(%arg0: i32) -> (i32, i32) {
    %c0_i32 = arith.constant 0 : i32
    %c0_i32_0 = arith.constant 0 : i32
    %c0_i32_1 = arith.constant 0 : i32
    return %c0_i32, %c0_i32_0 : i32, i32
  }
  func.func @transform_3(%arg0: i32) -> (i32, i32) {
    %c0_i32 = arith.constant 0 : i32
    %c0_i32_0 = arith.constant 0 : i32
    %c0_i32_1 = arith.constant 0 : i32
    return %c0_i32, %c0_i32_0 : i32, i32
  }
  func.func @transform_4(%arg0: i32) -> (i32, i32) {
    %c0_i32 = arith.constant 0 : i32
    %c0_i32_0 = arith.constant 0 : i32
    return %arg0, %c0_i32 : i32, i32
  }
}

</mosaic_0001>

<bundles_post_ra>
// kernel: a_call__.2
= control target key start
LH: loop header
LB: loop body
LE: loop exit
PB: predicated region body
PF: predicated region fallthrough
CT: control target
= control target key end

     0   :  { %vm21_vm0 = vcmask 261120   ;;  %v1294_v0 = vmov 0.0   ;;  %vm1295_vm1 = vmmov 0   ;;  %vm41_vm2 = vcmask 130048   ;;  %s1296_s5 = smov 64   ;;  %s1297_s6 = smov 32   ;;  %s1566_s1 = inlined_call_operand.vmem [shape: f32[16,128], index: 1, kind: input, shape index: {}]   ;;  %s1567_s2 = inlined_call_operand.vmem [shape: f32[32,128], index: 2, kind: input, shape index: {}]   ;;  %s1568_s0 = inlined_call_operand.vmem [shape: f32[64,16], index: 0, kind: input, shape index: {}]   ;;  %s1569_s3 = inlined_call_operand.vmem [shape: f32[1,128], index: 3, kind: input, shape index: {}]   ;;  %s1570_s4 = inlined_call_operand.vmem [shape: f32[64,32], index: 4, kind: output, shape index: {}]  }
   0x1   :  { %1137 = vmatprep.subr.mxu1 %v1294_v0  ;;  %v33_v1 = vld [vmem:[%s1566_s1 + $0x8] sm:$0xff]  ;;  %v1331_v2 = vld [vmem:[%s1567_s2 + $0x18] sm:$0xff]  ;;  %v32_v3 = vld [vmem:[%s1566_s1] sm:$0xff]  ;;  %1145 = vmatprep.mubr.msk.f32.mxu1 %vm1295_vm1, %v1294_v0  ;;  %22 = vst.msk [vmem:[#allocation2] sm:$0xff] %vm21_vm0, %v1294_v0 }
   0x2   :  { %23 = vst.msk [vmem:[#allocation3] sm:$0xff] %vm21_vm0, %v1294_v0  ;;  %1121 = vmatprep.subr.mxu0 %v33_v1  ;;  %1138 = vmatpush3.msra.mxu1 %v1331_v2  ;;  %v1346_v4 = vld [vmem:[%s1567_s2 + $0x10] sm:$0xff]  ;;  %v24_v5 = vld [vmem:[%s1568_s0] sm:$0xff]  ;;  %v25_v6 = vld [vmem:[%s1568_s0 + $0x8] sm:$0xff] }
   0x3   :  { %1122 = vmatpush3.msra.mxu0 %v33_v1  ;;  %1139 = vmatprep.subr.mxu1 %v1294_v0  ;;  %v1359_v7 = vld [vmem:[%s1567_s2 + $0x8] sm:$0xff]  ;;  %v1367_v8 = vld [vmem:[%s1567_s2] sm:$0xff]  ;;  %v26_v47 = vld [vmem:[%s1568_s0 + $0x10] sm:$0xff]  ;;  %s1298_s2 = smov 96  }
   0x4   :  { %1123 = vmatprep.subr.mxu0 %v32_v3  ;;  %1140 = vmatpush3.msra.mxu1 %v1346_v4  ;;  %v1396_v11 = vld [vmem:[%s1569_s3] ss:$0 sm:$0xff]  ;;  %v27_v48 = vld [vmem:[%s1568_s0 + $0x18] sm:$0xff]  ;;  %v29_v50 = vld [vmem:[%s1568_s0 + $0x28] sm:$0xff] }
   0x5   :  { %1124 = vmatpush3.msra.mxu0 %v32_v3  ;;  %1125 = vmatprep.mubr.msk.f32.mxu0 %vm41_vm2, %v24_v5  ;;  %v28_v49 = vld [vmem:[%s1568_s0 + $0x20] sm:$0xff]  ;;  %v30_v51 = vld [vmem:[%s1568_s0 + $0x30] sm:$0xff]  ;;  %v31_v52 = vld [vmem:[%s1568_s0 + $0x38] sm:$0xff] }
   0x6   :  { %1141 = vmatprep.subr.mxu1 %v1294_v0  ;;  %1126 = vmatmul.mubr.msk.f32.vlgmr.msra.gmra.mxu0 %vm41_vm2, %v25_v6 }
   0x7   :  { %1142 = vmatpush3.msra.mxu1 %v1359_v7  ;;  %1159 = vmatprep.subr.mxu0 %v1294_v0 }
   0x8   :  { %1143 = vmatprep.subr.mxu1 %v1294_v0  ;;  %v183_v9 = vld [vmem:[#allocation2] sm:$0xff]  ;;  %1160 = vmatpush3.msra.mxu0 %v1331_v2 }
   0x9   :  { %1144 = vmatpush3.msra.mxu1 %v1367_v8  ;;  %1161 = vmatprep.subr.mxu0 %v1294_v0  ;;  %v184_v18 = vld [vmem:[#allocation3] sm:$0xff] }
   0xa   :  { %1146 = vmatmul.mubr.msk.f32.vlgmr.msra.gmra.mxu1 %vm21_vm0, %v183_v9  ;;  %1148 = vmatprep.subr.mxu1 %v1294_v0 }
   0xb   :  { %1149 = vmatpush3.msra.mxu1 %v1331_v2  ;;  %1156 = vmatprep.mubr.msk.f32.mxu1 %vm1295_vm1, %v1294_v0 }
   0xc   :  { %1150 = vmatprep.subr.mxu1 %v1294_v0  ;;  %1162 = vmatpush3.msra.mxu0 %v1346_v4 }
   0xd   :  { %1151 = vmatpush3.msra.mxu1 %v1346_v4  ;;  %1163 = vmatprep.subr.mxu0 %v1294_v0 }
   0xe   :  { %1152 = vmatprep.subr.mxu1 %v1294_v0  ;;  %1164 = vmatpush3.msra.mxu0 %v1359_v7 }
   0xf   :  { %1153 = vmatpush3.msra.mxu1 %v1359_v7  ;;  %1165 = vmatprep.subr.mxu0 %v1294_v0 }
  0x10   :  { %1154 = vmatprep.subr.mxu1 %v1294_v0  ;;  %1166 = vmatpush3.msra.mxu0 %v1367_v8 }
  0x11   :  { %1155 = vmatpush3.msra.mxu1 %v1367_v8  ;;  %1181 = vmatprep.subr.mxu0 %v1294_v0 }
  0x12   :  { %1170 = vmatprep.subr.mxu1 %v1294_v0  ;;  %1128 = vmatprep.mubr.msk.f32.mxu0 %vm41_vm2, %v26_v47 }
  0x13   :  { %1129 = vmatmul.mubr.msk.f32.gmra.mxu0 %vm41_vm2, %v27_v48 }
  0x14   :  { %1131 = vmatprep.mubr.msk.f32.mxu0 %vm41_vm2, %v28_v49 }
  0x17   :  { %1132 = vmatmul.mubr.msk.f32.gmra.mxu0 %vm41_vm2, %v29_v50 }
  0x18   :  { %1134 = vmatprep.mubr.msk.f32.mxu0 %vm41_vm2, %v30_v51 }
  0x1b   :  { %1135 = vmatmul.mubr.msk.f32.gmra.mxu0 %vm41_vm2, %v31_v52 }
  0x1c   :  { %1167 = vmatprep.mubr.msk.f32.mxu0 %vm1295_vm1, %v1294_v0 }
  0xc6   :  { %v1127_v10 = vpop.f32.mrf.mxu0 }
  0xc7   :  { %v138_v33 = vadd.f32 %v1127_v10, %v1396_v11 }
  0xc8   :  { %v132_v12 = vpop.f32.mrf.mxu0 }
  0xc9   :  { %v133_v13 = vadd.f32 %v1396_v11, %v132_v12 }
  0xca   :  { %v256_v14 = vpop.f32.mrf.mxu1 }
  0xcb   :  { %v260_v15 = vadd.f32 %v256_v14, %v133_v13 }
  0xcc   :  { %v1147_v16 = vpop.f32.mrf.mxu1 }
  0xcd   :  { %1230 = vtanh.f32 %v260_v15  ;;  %v1049_v19 = vmul.f32 -1.442695, %v260_v15 }
  0xcf   :  { %1232 = vpow2.f32 %v1049_v19 }
  0xd3   :  { %v1130_v57 = vpop.f32.mrf.mxu0 }
  0xd5   :  { %v142_v58 = vpop.f32.mrf.mxu0 }
  0xd6   :  { %v143_v63 = vadd.f32 %v1396_v11, %v142_v58 }
  0xd7   :  { %v1465_v59 = vpop.f32.mrf.mxu0 }
  0xd9   :  { %v1467_v60 = vpop.f32.mrf.mxu0 }
  0xda   :  { %v1231_v17 = vpop.eup %1230 }
  0xdb   :  { %274 = vrot.lane.b32.xlu0 %v1231_v17, %s1296_s5  ;;  %v1469_v61 = vpop.f32.mrf.mxu0 }
  0xdc   :  { %v1233_v20 = vpop.eup %1232 }
  0xdd   :  { %v264_v21 = vadd.f32 1.0, %v1233_v20  ;;  %v1471_v62 = vpop.f32.mrf.mxu0 }
  0xdf   :  { %269 = vrot.lane.b32.xlu0 %v184_v18, %s1297_s6  ;;  %1234 = vrcp.f32 %v264_v21 }
  0xec   :  { %v1235_v22 = vpop.eup %1234 }
 0x14d   :  { %v275_v23 = vpop.permute.xlu0 %274 }
 0x14e   :  { %v277_v24 = vmul.f32 %v1235_v22, %v275_v23  ;;  %v148_v23 = vadd.f32 %v1130_v57, %v1396_v11 }
 0x150   :  { %279 = vrot.lane.b32.xlu1 %v277_v24, %s1297_s6 }
 0x151   :  { %v270_v25 = vpop.permute.xlu0 %269 }
 0x152   :  { %v272_v26 = vmul.f32 %v1235_v22, %v270_v25 }
 0x1c2   :  { %v280_v27 = vpop.permute.xlu1 %279 }
 0x1c3   :  { %v282_v28 = vadd.f32 %v280_v27, %v272_v26 }
 0x1c5   :  { %1236 = vtanh.f32 %v282_v28 }
 0x1d2   :  { %v1237_v29 = vpop.eup %1236 }
 0x1d3   :  { %285 = vrot.lane.b32.xlu1 %v1237_v29, %s1296_s5 }
 0x245   :  { %v286_v30 = vpop.permute.xlu1 %285 }
 0x246   :  { %v288_v31 = vmul.f32 %v1235_v22, %v286_v30 }
 0x248   :  { %290 = vrot.lane.b32.xlu0 %v288_v31, %s1297_s6 }
 0x2ba   :  { %v291_v32 = vpop.permute.xlu0 %290 }
 0x2bb   :  { %293 = vst.msk [vmem:[%s1570_s4] sm:$0xff] %vm21_vm0, %v291_v32  ;;  %1157 = vmatmul.mubr.msk.f32.vlgmr.msra.gmra.mxu1 %vm21_vm0, %v291_v32 }
 0x2bc   :  { %1171 = vmatpush3.msra.mxu1 %v1331_v2  ;;  %1178 = vmatprep.mubr.msk.f32.mxu1 %vm1295_vm1, %v1294_v0 }
 0x2bd   :  { %1172 = vmatprep.subr.mxu1 %v1294_v0 }
 0x2be   :  { %1173 = vmatpush3.msra.mxu1 %v1346_v4 }
 0x2bf   :  { %1174 = vmatprep.subr.mxu1 %v1294_v0 }
 0x2c0   :  { %1175 = vmatpush3.msra.mxu1 %v1359_v7 }
 0x2c1   :  { %1176 = vmatprep.subr.mxu1 %v1294_v0 }
 0x2c2   :  { %1177 = vmatpush3.msra.mxu1 %v1367_v8 }
 0x2c3   :  { %1192 = vmatprep.subr.mxu1 %v1294_v0 }
 0x37b   :  { %v364_v34 = vpop.f32.mrf.mxu1 }
 0x37c   :  { %v368_v35 = vadd.f32 %v364_v34, %v138_v33 }
 0x37d   :  { %v1158_v36 = vpop.f32.mrf.mxu1 }
 0x37e   :  { %1238 = vtanh.f32 %v368_v35  ;;  %v1051_v38 = vmul.f32 -1.442695, %v368_v35 }
 0x380   :  { %1240 = vpow2.f32 %v1051_v38 }
 0x38b   :  { %v1239_v37 = vpop.eup %1238 }
 0x38c   :  { %378 = vrot.lane.b32.xlu1 %v1239_v37, %s1296_s5 }
 0x38d   :  { %v1241_v39 = vpop.eup %1240 }
 0x38e   :  { %v372_v40 = vadd.f32 1.0, %v1241_v39 }
 0x390   :  { %1242 = vrcp.f32 %v372_v40 }
 0x39d   :  { %v1243_v41 = vpop.eup %1242 }
 0x39e   :  { %v376_v44 = vmul.f32 %v1243_v41, %v282_v28 }
 0x3fe   :  { %v379_v42 = vpop.permute.xlu1 %378 }
 0x3ff   :  { %v381_v43 = vmul.f32 %v1243_v41, %v379_v42 }
 0x401   :  { %383 = vrot.lane.b32.xlu0 %v381_v43, %s1297_s6 }
 0x473   :  { %v384_v45 = vpop.permute.xlu0 %383 }
 0x474   :  { %v386_v46 = vadd.f32 %v384_v45, %v376_v44 }
 0x476   :  { %1244 = vtanh.f32 %v386_v46 }
 0x483   :  { %v1245_v53 = vpop.eup %1244 }
 0x484   :  { %389 = vrot.lane.b32.xlu1 %v1245_v53, %s1296_s5 }
 0x4f6   :  { %v390_v54 = vpop.permute.xlu1 %389 }
 0x4f7   :  { %v392_v55 = vmul.f32 %v1243_v41, %v390_v54  ;;  %v153_v41 = vadd.f32 %v1396_v11, %v1467_v60  ;;  %v158_v60 = vadd.f32 %v1465_v59, %v1396_v11 }
 0x4f9   :  { %394 = vrot.lane.b32.xlu0 %v392_v55, %s1297_s6 }
 0x56b   :  { %v395_v56 = vpop.permute.xlu0 %394 }
 0x56c   :  { %1052 = vst.msk [vmem:[%s1570_s4 + $0x8] sm:$0xff] %vm21_vm0, %v395_v56  ;;  %1168 = vmatmul.mubr.msk.f32.vlgmr.msra.gmra.mxu0 %vm21_vm0, %v395_v56 }
 0x56d   :  { %1182 = vmatpush3.msra.mxu0 %v1331_v2  ;;  %1189 = vmatprep.mubr.msk.f32.mxu0 %vm1295_vm1, %v1294_v0 }
 0x56e   :  { %1183 = vmatprep.subr.mxu0 %v1294_v0 }
 0x56f   :  { %1184 = vmatpush3.msra.mxu0 %v1346_v4 }
 0x570   :  { %1185 = vmatprep.subr.mxu0 %v1294_v0 }
 0x571   :  { %1186 = vmatpush3.msra.mxu0 %v1359_v7 }
 0x572   :  { %1187 = vmatprep.subr.mxu0 %v1294_v0 }
 0x573   :  { %1188 = vmatpush3.msra.mxu0 %v1367_v8 }
 0x574   :  { %1203 = vmatprep.subr.mxu0 %v1294_v0 }
 0x62c   :  { %v469_v1 = vpop.f32.mrf.mxu0 }
 0x62d   :  { %v473_v3 = vadd.f32 %v469_v1, %v143_v63 }
 0x62e   :  { %v1169_v5 = vpop.f32.mrf.mxu0 }
 0x62f   :  { %1246 = vtanh.f32 %v473_v3  ;;  %v1054_v9 = vmul.f32 -1.442695, %v473_v3 }
 0x631   :  { %1248 = vpow2.f32 %v1054_v9 }
 0x63c   :  { %v1247_v6 = vpop.eup %1246 }
 0x63d   :  { %483 = vrot.lane.b32.xlu1 %v1247_v6, %s1296_s5 }
 0x63e   :  { %v1249_v10 = vpop.eup %1248 }
 0x63f   :  { %v477_v12 = vadd.f32 1.0, %v1249_v10 }
 0x641   :  { %1250 = vrcp.f32 %v477_v12 }
 0x64e   :  { %v1251_v13 = vpop.eup %1250 }
 0x64f   :  { %v481_v16 = vmul.f32 %v1251_v13, %v386_v46 }
 0x6af   :  { %v484_v14 = vpop.permute.xlu1 %483 }
 0x6b0   :  { %v486_v15 = vmul.f32 %v1251_v13, %v484_v14 }
 0x6b2   :  { %488 = vrot.lane.b32.xlu0 %v486_v15, %s1297_s6 }
 0x724   :  { %v489_v17 = vpop.permute.xlu0 %488 }
 0x725   :  { %v491_v18 = vadd.f32 %v489_v17, %v481_v16  ;;  %v163_v16 = vadd.f32 %v1396_v11, %v1471_v62 }
 0x727   :  { %1252 = vtanh.f32 %v491_v18 }
 0x734   :  { %v1253_v19 = vpop.eup %1252 }
 0x735   :  { %494 = vrot.lane.b32.xlu1 %v1253_v19, %s1296_s5 }
 0x7a7   :  { %v495_v20 = vpop.permute.xlu1 %494 }
 0x7a8   :  { %v497_v21 = vmul.f32 %v1251_v13, %v495_v20 }
 0x7aa   :  { %499 = vrot.lane.b32.xlu0 %v497_v21, %s1297_s6 }
 0x81c   :  { %v500_v22 = vpop.permute.xlu0 %499 }
 0x81d   :  { %1055 = vst.msk [vmem:[%s1570_s4 + $0x10] sm:$0xff] %vm21_vm0, %v500_v22  ;;  %1179 = vmatmul.mubr.msk.f32.vlgmr.msra.gmra.mxu1 %vm21_vm0, %v500_v22 }
 0x81e   :  { %1193 = vmatpush3.msra.mxu1 %v1331_v2  ;;  %1200 = vmatprep.mubr.msk.f32.mxu1 %vm1295_vm1, %v1294_v0 }
 0x81f   :  { %1194 = vmatprep.subr.mxu1 %v1294_v0 }
 0x820   :  { %1195 = vmatpush3.msra.mxu1 %v1346_v4 }
 0x821   :  { %1196 = vmatprep.subr.mxu1 %v1294_v0 }
 0x822   :  { %1197 = vmatpush3.msra.mxu1 %v1359_v7 }
 0x823   :  { %1198 = vmatprep.subr.mxu1 %v1294_v0 }
 0x824   :  { %1199 = vmatpush3.msra.mxu1 %v1367_v8 }
 0x825   :  { %1214 = vmatprep.subr.mxu1 %v1294_v0 }
 0x8dd   :  { %v574_v24 = vpop.f32.mrf.mxu1 }
 0x8de   :  { %v578_v25 = vadd.f32 %v574_v24, %v148_v23 }
 0x8df   :  { %v1180_v26 = vpop.f32.mrf.mxu1 }
 0x8e0   :  { %1254 = vtanh.f32 %v578_v25  ;;  %v1057_v28 = vmul.f32 -1.442695, %v578_v25 }
 0x8e2   :  { %1256 = vpow2.f32 %v1057_v28 }
 0x8ed   :  { %v1255_v27 = vpop.eup %1254 }
 0x8ee   :  { %588 = vrot.lane.b32.xlu1 %v1255_v27, %s1296_s5 }
 0x8ef   :  { %v1257_v29 = vpop.eup %1256 }
 0x8f0   :  { %v582_v30 = vadd.f32 1.0, %v1257_v29 }
 0x8f2   :  { %1258 = vrcp.f32 %v582_v30 }
 0x8ff   :  { %v1259_v31 = vpop.eup %1258 }
 0x900   :  { %v586_v34 = vmul.f32 %v1259_v31, %v491_v18 }
 0x960   :  { %v589_v32 = vpop.permute.xlu1 %588 }
 0x961   :  { %v591_v33 = vmul.f32 %v1259_v31, %v589_v32 }
 0x963   :  { %593 = vrot.lane.b32.xlu0 %v591_v33, %s1297_s6  ;;  %v168_v33 = vadd.f32 %v1469_v61, %v1396_v11 }
 0x9d5   :  { %v594_v35 = vpop.permute.xlu0 %593 }
 0x9d6   :  { %v596_v36 = vadd.f32 %v594_v35, %v586_v34 }
 0x9d8   :  { %1260 = vtanh.f32 %v596_v36 }
 0x9e5   :  { %v1261_v37 = vpop.eup %1260 }
 0x9e6   :  { %599 = vrot.lane.b32.xlu1 %v1261_v37, %s1296_s5 }
 0xa58   :  { %v600_v38 = vpop.permute.xlu1 %599 }
 0xa59   :  { %v602_v39 = vmul.f32 %v1259_v31, %v600_v38 }
 0xa5b   :  { %604 = vrot.lane.b32.xlu0 %v602_v39, %s1297_s6 }
 0xacd   :  { %v605_v40 = vpop.permute.xlu0 %604 }
 0xace   :  { %1058 = vst.msk [vmem:[%s1570_s4 + $0x18] sm:$0xff] %vm21_vm0, %v605_v40  ;;  %1190 = vmatmul.mubr.msk.f32.vlgmr.msra.gmra.mxu0 %vm21_vm0, %v605_v40 }
 0xacf   :  { %1204 = vmatpush3.msra.mxu0 %v1331_v2  ;;  %1211 = vmatprep.mubr.msk.f32.mxu0 %vm1295_vm1, %v1294_v0 }
 0xad0   :  { %1205 = vmatprep.subr.mxu0 %v1294_v0 }
 0xad1   :  { %1206 = vmatpush3.msra.mxu0 %v1346_v4 }
 0xad2   :  { %1207 = vmatprep.subr.mxu0 %v1294_v0 }
 0xad3   :  { %1208 = vmatpush3.msra.mxu0 %v1359_v7 }
 0xad4   :  { %1209 = vmatprep.subr.mxu0 %v1294_v0 }
 0xad5   :  { %1210 = vmatpush3.msra.mxu0 %v1367_v8 }
 0xb8e   :  { %v679_v42 = vpop.f32.mrf.mxu0 }
 0xb8f   :  { %v683_v43 = vadd.f32 %v679_v42, %v153_v41 }
 0xb90   :  { %v1191_v44 = vpop.f32.mrf.mxu0 }
 0xb91   :  { %1262 = vtanh.f32 %v683_v43  ;;  %v1060_v46 = vmul.f32 -1.442695, %v683_v43 }
 0xb93   :  { %1264 = vpow2.f32 %v1060_v46 }
 0xb9e   :  { %v1263_v45 = vpop.eup %1262 }
 0xb9f   :  { %693 = vrot.lane.b32.xlu1 %v1263_v45, %s1296_s5 }
 0xba0   :  { %v1265_v47 = vpop.eup %1264 }
 0xba1   :  { %v687_v48 = vadd.f32 1.0, %v1265_v47 }
 0xba3   :  { %1266 = vrcp.f32 %v687_v48 }
 0xbb0   :  { %v1267_v49 = vpop.eup %1266 }
 0xbb1   :  { %v691_v52 = vmul.f32 %v1267_v49, %v596_v36 }
 0xc11   :  { %v694_v50 = vpop.permute.xlu1 %693 }
 0xc12   :  { %v696_v51 = vmul.f32 %v1267_v49, %v694_v50 }
 0xc14   :  { %698 = vrot.lane.b32.xlu0 %v696_v51, %s1297_s6 }
 0xc86   :  { %v699_v53 = vpop.permute.xlu0 %698 }
 0xc87   :  { %v701_v54 = vadd.f32 %v699_v53, %v691_v52 }
 0xc89   :  { %1268 = vtanh.f32 %v701_v54 }
 0xc96   :  { %v1269_v55 = vpop.eup %1268 }
 0xc97   :  { %704 = vrot.lane.b32.xlu1 %v1269_v55, %s1296_s5 }
 0xd09   :  { %v705_v56 = vpop.permute.xlu1 %704 }
 0xd0a   :  { %v707_v57 = vmul.f32 %v1267_v49, %v705_v56 }
 0xd0c   :  { %709 = vrot.lane.b32.xlu0 %v707_v57, %s1297_s6 }
 0xd7e   :  { %v710_v58 = vpop.permute.xlu0 %709 }
 0xd7f   :  { %1061 = vst.msk [vmem:[%s1570_s4 + $0x20] sm:$0xff] %vm21_vm0, %v710_v58  ;;  %1201 = vmatmul.mubr.msk.f32.vlgmr.msra.gmra.mxu1 %vm21_vm0, %v710_v58 }
 0xd80   :  { %1215 = vmatpush3.msra.mxu1 %v1331_v2  ;;  %1222 = vmatprep.mubr.msk.f32.mxu1 %vm1295_vm1, %v1294_v0 }
 0xd81   :  { %1216 = vmatprep.subr.mxu1 %v1294_v0 }
 0xd82   :  { %1217 = vmatpush3.msra.mxu1 %v1346_v4 }
 0xd83   :  { %1218 = vmatprep.subr.mxu1 %v1294_v0 }
 0xd84   :  { %1219 = vmatpush3.msra.mxu1 %v1359_v7 }
 0xd85   :  { %1220 = vmatprep.subr.mxu1 %v1294_v0 }
 0xd86   :  { %1221 = vmatpush3.msra.mxu1 %v1367_v8 }
 0xe3f   :  { %v784_v63 = vpop.f32.mrf.mxu1 }
 0xe40   :  { %v788_v2 = vadd.f32 %v784_v63, %v158_v60 }
 0xe41   :  { %v1202_v1 = vpop.f32.mrf.mxu1 }
 0xe42   :  { %1270 = vtanh.f32 %v788_v2  ;;  %v1063_v5 = vmul.f32 -1.442695, %v788_v2 }
 0xe44   :  { %1272 = vpow2.f32 %v1063_v5 }
 0xe4f   :  { %v1271_v3 = vpop.eup %1270 }
 0xe50   :  { %798 = vrot.lane.b32.xlu1 %v1271_v3, %s1296_s5 }
 0xe51   :  { %v1273_v4 = vpop.eup %1272 }
 0xe52   :  { %v792_v6 = vadd.f32 1.0, %v1273_v4 }
 0xe54   :  { %1274 = vrcp.f32 %v792_v6 }
 0xe61   :  { %v1275_v7 = vpop.eup %1274 }
 0xe62   :  { %v796_v8 = vmul.f32 %v1275_v7, %v701_v54 }
 0xec2   :  { %v799_v9 = vpop.permute.xlu1 %798 }
 0xec3   :  { %v801_v0 = vmul.f32 %v1275_v7, %v799_v9 }
 0xec5   :  { %803 = vrot.lane.b32.xlu0 %v801_v0, %s1297_s6 }
 0xf37   :  { %v804_v10 = vpop.permute.xlu0 %803 }
 0xf38   :  { %v806_v59 = vadd.f32 %v804_v10, %v796_v8 }
 0xf3a   :  { %1276 = vtanh.f32 %v806_v59 }
 0xf47   :  { %v1277_v12 = vpop.eup %1276 }
 0xf48   :  { %809 = vrot.lane.b32.xlu1 %v1277_v12, %s1296_s5 }
 0xfba   :  { %v810_v13 = vpop.permute.xlu1 %809 }
 0xfbb   :  { %v812_v14 = vmul.f32 %v1275_v7, %v810_v13 }
 0xfbd   :  { %814 = vrot.lane.b32.xlu0 %v812_v14, %s1297_s6 }
0x102f   :  { %v815_v15 = vpop.permute.xlu0 %814 }
0x1030   :  { %1064 = vst.msk [vmem:[%s1570_s4 + $0x28] sm:$0xff] %vm21_vm0, %v815_v15  ;;  %1212 = vmatmul.mubr.msk.f32.vlgmr.msra.gmra.mxu0 %vm21_vm0, %v815_v15 }
0x10f0   :  { %v889_v17 = vpop.f32.mrf.mxu0 }
0x10f1   :  { %v893_v18 = vadd.f32 %v889_v17, %v163_v16 }
0x10f2   :  { %v1213_v19 = vpop.f32.mrf.mxu0 }
0x10f3   :  { %1278 = vtanh.f32 %v893_v18  ;;  %v1066_v21 = vmul.f32 -1.442695, %v893_v18 }
0x10f5   :  { %1280 = vpow2.f32 %v1066_v21 }
0x1100   :  { %v1279_v20 = vpop.eup %1278 }
0x1101   :  { %903 = vrot.lane.b32.xlu1 %v1279_v20, %s1296_s5 }
0x1102   :  { %v1281_v22 = vpop.eup %1280 }
0x1103   :  { %v897_v23 = vadd.f32 1.0, %v1281_v22 }
0x1105   :  { %1282 = vrcp.f32 %v897_v23 }
0x1112   :  { %v1283_v24 = vpop.eup %1282 }
0x1113   :  { %v901_v27 = vmul.f32 %v1283_v24, %v806_v59 }
0x1173   :  { %v904_v25 = vpop.permute.xlu1 %903 }
0x1174   :  { %v906_v26 = vmul.f32 %v1283_v24, %v904_v25 }
0x1176   :  { %908 = vrot.lane.b32.xlu0 %v906_v26, %s1297_s6 }
0x11e8   :  { %v909_v28 = vpop.permute.xlu0 %908 }
0x11e9   :  { %v911_v62 = vadd.f32 %v909_v28, %v901_v27 }
0x11eb   :  { %1284 = vtanh.f32 %v911_v62 }
0x11f8   :  { %v1285_v29 = vpop.eup %1284 }
0x11f9   :  { %914 = vrot.lane.b32.xlu1 %v1285_v29, %s1296_s5 }
0x126b   :  { %v915_v30 = vpop.permute.xlu1 %914 }
0x126c   :  { %v917_v31 = vmul.f32 %v1283_v24, %v915_v30 }
0x126e   :  { %919 = vrot.lane.b32.xlu0 %v917_v31, %s1297_s6 }
0x12e0   :  { %v920_v32 = vpop.permute.xlu0 %919 }
0x12e1   :  { %1067 = vst.msk [vmem:[%s1570_s4 + $0x30] sm:$0xff] %vm21_vm0, %v920_v32  ;;  %1223 = vmatmul.mubr.msk.f32.vlgmr.msra.gmra.mxu1 %vm21_vm0, %v920_v32 }
0x13a1   :  { %v994_v34 = vpop.f32.mrf.mxu1 }
0x13a2   :  { %v998_v35 = vadd.f32 %v994_v34, %v168_v33 }
0x13a3   :  { %v1224_v36 = vpop.f32.mrf.mxu1 }
0x13a4   :  { %1286 = vtanh.f32 %v998_v35  ;;  %v1069_v38 = vmul.f32 -1.442695, %v998_v35 }
0x13a6   :  { %1288 = vpow2.f32 %v1069_v38 }
0x13b1   :  { %v1287_v37 = vpop.eup %1286 }
0x13b2   :  { %1008 = vrot.lane.b32.xlu1 %v1287_v37, %s1296_s5 }
0x13b3   :  { %v1289_v39 = vpop.eup %1288 }
0x13b4   :  { %v1002_v40 = vadd.f32 1.0, %v1289_v39 }
0x13b6   :  { %1290 = vrcp.f32 %v1002_v40 }
0x13c3   :  { %v1291_v41 = vpop.eup %1290 }
0x13c4   :  { %v1006_v44 = vmul.f32 %v1291_v41, %v911_v62 }
0x1424   :  { %v1009_v42 = vpop.permute.xlu1 %1008 }
0x1425   :  { %v1011_v43 = vmul.f32 %v1291_v41, %v1009_v42 }
0x1427   :  { %1013 = vrot.lane.b32.xlu0 %v1011_v43, %s1297_s6 }
0x1499   :  { %v1014_v45 = vpop.permute.xlu0 %1013 }
0x149a   :  { %v1016_v11 = vadd.f32 %v1014_v45, %v1006_v44 }
0x149c   :  { %1292 = vtanh.f32 %v1016_v11 }
0x14a9   :  { %v1293_v61 = vpop.eup %1292 }
0x14aa   :  { %1019 = vrot.lane.b32.xlu1 %v1293_v61, %s1296_s5 }
0x14ae   :  { %1031 = vrot.lane.b32.xlu1 %v1016_v11, %s1298_s2 }
0x151c   :  { %v1020_v46 = vpop.permute.xlu1 %1019 }
0x151d   :  { %v1022_v47 = vmul.f32 %v1291_v41, %v1020_v46 }
0x151f   :  { %1024 = vrot.lane.b32.xlu0 %v1022_v47, %s1297_s6 }
0x1520   :  { %v1032_v48 = vpop.permute.xlu1 %1031 }
0x1521   :  { %1034 = vst.msk [vmem:[#allocation3] sm:$0xff] %vm21_vm0, %v1032_v48 }
0x1591   :  { %v1025_v49 = vpop.permute.xlu0 %1024 }
0x1592   :  { %1070 = vst.msk [vmem:[%s1570_s4 + $0x38] sm:$0xff] %vm21_vm0, %v1025_v49  ;;  %1029 = vst.msk [vmem:[#allocation2] sm:$0xff] %vm21_vm0, %v1025_v49 }

// kernel: a_call__.3
= control target key start
LH: loop header
LB: loop body
LE: loop exit
PB: predicated region body
PF: predicated region fallthrough
CT: control target
= control target key end

     0   :  { %vm21_vm0 = vcmask 261120   ;;  %v1301_v2 = vmov 0.0   ;;  %vm1302_vm1 = vmmov 0   ;;  %s1303_s9 = smov 64   ;;  %s1304_s10 = smov 32   ;;  %s1579_s1 = inlined_call_operand.vmem [shape: f32[32,128], index: 1, kind: input, shape index: {}]   ;;  %s1580_s2 = inlined_call_operand.vmem [shape: f32[32,128], index: 2, kind: input, shape index: {}]   ;;  %s1581_s0 = inlined_call_operand.vmem [shape: f32[64,32], index: 0, kind: input, shape index: {}]   ;;  %s1582_s3 = inlined_call_operand.vmem [shape: f32[1,128], index: 3, kind: input, shape index: {}]   ;;  %s1583_s4 = inlined_call_operand.vmem [shape: f32[64,32], index: 4, kind: output, shape index: {}]  }
   0x1   :  { %v35_v0 = vld [vmem:[%s1579_s1 + $0x18] sm:$0xff]  ;;  %v34_v1 = vld [vmem:[%s1579_s1 + $0x10] sm:$0xff]  ;;  %1144 = vmatprep.subr.mxu1 %v1301_v2  ;;  %22 = vst.msk [vmem:[#allocation2] sm:$0xff] %vm21_vm0, %v1301_v2  ;;  %23 = vst.msk [vmem:[#allocation3] sm:$0xff] %vm21_vm0, %v1301_v2  ;;  %1152 = vmatprep.mubr.msk.f32.mxu1 %vm1302_vm1, %v1301_v2 }
   0x2   :  { %v1341_v3 = vld [vmem:[%s1580_s2 + $0x18] sm:$0xff]  ;;  %1124 = vmatprep.subr.mxu0 %v35_v0  ;;  %v1353_v4 = vld [vmem:[%s1580_s2 + $0x10] sm:$0xff]  ;;  %v33_v5 = vld [vmem:[%s1579_s1 + $0x8] sm:$0xff] }
   0x3   :  { %1145 = vmatpush3.msra.mxu1 %v1341_v3  ;;  %1125 = vmatpush3.msra.mxu0 %v35_v0  ;;  %v24_v6 = vld [vmem:[%s1581_s0] sm:$0xff]  ;;  %v1366_v7 = vld [vmem:[%s1580_s2 + $0x8] sm:$0xff]  ;;  %v26_v49 = vld [vmem:[%s1581_s0 + $0x10] sm:$0xff] }
   0x4   :  { %1146 = vmatprep.subr.mxu1 %v1301_v2  ;;  %1126 = vmatprep.subr.mxu0 %v34_v1  ;;  %v32_v8 = vld [vmem:[%s1579_s1] sm:$0xff]  ;;  %v25_v10 = vld [vmem:[%s1581_s0 + $0x8] sm:$0xff]  ;;  %v27_v50 = vld [vmem:[%s1581_s0 + $0x18] sm:$0xff]  ;;  %s1305_s1 = smov 96  }
   0x5   :  { %1147 = vmatpush3.msra.mxu1 %v1353_v4  ;;  %1127 = vmatpush3.msra.mxu0 %v34_v1  ;;  %v1376_v9 = vld [vmem:[%s1580_s2] sm:$0xff]  ;;  %v29_v52 = vld [vmem:[%s1581_s0 + $0x28] sm:$0xff]  ;;  %v30_v53 = vld [vmem:[%s1581_s0 + $0x30] sm:$0xff] }
   0x6   :  { %1148 = vmatprep.subr.mxu1 %v1301_v2  ;;  %1128 = vmatprep.subr.mxu0 %v33_v5  ;;  %v1409_v14 = vld [vmem:[%s1582_s3] ss:$0 sm:$0xff]  ;;  %v31_v54 = vld [vmem:[%s1581_s0 + $0x38] sm:$0xff] }
   0x7   :  { %1132 = vmatprep.mubr.msk.f32.mxu0 %vm21_vm0, %v24_v6  ;;  %1129 = vmatpush3.msra.mxu0 %v33_v5  ;;  %v28_v51 = vld [vmem:[%s1581_s0 + $0x20] sm:$0xff] }
   0x8   :  { %1149 = vmatpush3.msra.mxu1 %v1366_v7  ;;  %1130 = vmatprep.subr.mxu0 %v32_v8  ;;  %v185_v11 = vld [vmem:[#allocation2] sm:$0xff]  ;;  %v186_v20 = vld [vmem:[#allocation3] sm:$0xff] }
   0x9   :  { %1150 = vmatprep.subr.mxu1 %v1301_v2  ;;  %1131 = vmatpush3.msra.mxu0 %v32_v8 }
   0xa   :  { %1151 = vmatpush3.msra.mxu1 %v1376_v9  ;;  %1133 = vmatmul.mubr.msk.f32.vlgmr.msra.gmra.mxu0 %vm21_vm0, %v25_v10 }
   0xb   :  { %1153 = vmatmul.mubr.msk.f32.vlgmr.msra.gmra.mxu1 %vm21_vm0, %v185_v11  ;;  %1155 = vmatprep.subr.mxu1 %v1301_v2 }
   0xc   :  { %1163 = vmatprep.mubr.msk.f32.mxu1 %vm1302_vm1, %v1301_v2  ;;  %1156 = vmatpush3.msra.mxu1 %v1341_v3 }
   0xd   :  { %1166 = vmatprep.subr.mxu0 %v1301_v2  ;;  %1157 = vmatprep.subr.mxu1 %v1301_v2 }
   0xe   :  { %1167 = vmatpush3.msra.mxu0 %v1341_v3  ;;  %1158 = vmatpush3.msra.mxu1 %v1353_v4 }
   0xf   :  { %1168 = vmatprep.subr.mxu0 %v1301_v2  ;;  %1159 = vmatprep.subr.mxu1 %v1301_v2 }
  0x10   :  { %1169 = vmatpush3.msra.mxu0 %v1353_v4  ;;  %1160 = vmatpush3.msra.mxu1 %v1366_v7 }
  0x11   :  { %1170 = vmatprep.subr.mxu0 %v1301_v2  ;;  %1161 = vmatprep.subr.mxu1 %v1301_v2 }
  0x12   :  { %1171 = vmatpush3.msra.mxu0 %v1366_v7  ;;  %1162 = vmatpush3.msra.mxu1 %v1376_v9 }
  0x13   :  { %1172 = vmatprep.subr.mxu0 %v1301_v2  ;;  %1177 = vmatprep.subr.mxu1 %v1301_v2 }
  0x14   :  { %1173 = vmatpush3.msra.mxu0 %v1376_v9  ;;  %1135 = vmatprep.mubr.msk.f32.mxu0 %vm21_vm0, %v26_v49 }
  0x15   :  { %1188 = vmatprep.subr.mxu0 %v1301_v2  ;;  %1136 = vmatmul.mubr.msk.f32.gmra.mxu0 %vm21_vm0, %v27_v50 }
  0x16   :  { %1138 = vmatprep.mubr.msk.f32.mxu0 %vm21_vm0, %v28_v51 }
  0x19   :  { %1139 = vmatmul.mubr.msk.f32.gmra.mxu0 %vm21_vm0, %v29_v52 }
  0x1a   :  { %1141 = vmatprep.mubr.msk.f32.mxu0 %vm21_vm0, %v30_v53 }
  0x1d   :  { %1142 = vmatmul.mubr.msk.f32.gmra.mxu0 %vm21_vm0, %v31_v54 }
  0x1e   :  { %1174 = vmatprep.mubr.msk.f32.mxu0 %vm1302_vm1, %v1301_v2 }
  0xca   :  { %v1134_v12 = vpop.f32.mrf.mxu0 }
  0xcb   :  { %v257_v13 = vpop.f32.mrf.mxu1  ;;  %v140_v35 = vadd.f32 %v1134_v12, %v1409_v14 }
  0xcc   :  { %v134_v15 = vpop.f32.mrf.mxu0 }
  0xcd   :  { %v1154_v16 = vpop.f32.mrf.mxu1  ;;  %v135_v17 = vadd.f32 %v1409_v14, %v134_v15 }
  0xcf   :  { %v261_v18 = vadd.f32 %v257_v13, %v135_v17 }
  0xd1   :  { %1237 = vtanh.f32 %v261_v18  ;;  %v1050_v21 = vmul.f32 -1.442695, %v261_v18 }
  0xd3   :  { %1239 = vpow2.f32 %v1050_v21 }
  0xd5   :  { %v1137_v59 = vpop.f32.mrf.mxu0 }
  0xd7   :  { %v144_v60 = vpop.f32.mrf.mxu0 }
  0xd8   :  { %v145_v1 = vadd.f32 %v1409_v14, %v144_v60 }
  0xd9   :  { %v1478_v61 = vpop.f32.mrf.mxu0 }
  0xdb   :  { %v1480_v62 = vpop.f32.mrf.mxu0 }
  0xdd   :  { %v1482_v63 = vpop.f32.mrf.mxu0 }
  0xde   :  { %v1238_v19 = vpop.eup %1237 }
  0xdf   :  { %275 = vrot.lane.b32.xlu0 %v1238_v19, %s1303_s9  ;;  %v1484_v0 = vpop.f32.mrf.mxu0 }
  0xe0   :  { %v1240_v22 = vpop.eup %1239 }
  0xe1   :  { %v265_v23 = vadd.f32 1.0, %v1240_v22 }
  0xe3   :  { %270 = vrot.lane.b32.xlu0 %v186_v20, %s1304_s10  ;;  %1241 = vrcp.f32 %v265_v23 }
  0xf0   :  { %v1242_v24 = vpop.eup %1241 }
 0x151   :  { %v276_v25 = vpop.permute.xlu0 %275 }
 0x152   :  { %v278_v26 = vmul.f32 %v1242_v24, %v276_v25  ;;  %v150_v25 = vadd.f32 %v1137_v59, %v1409_v14 }
 0x154   :  { %280 = vrot.lane.b32.xlu1 %v278_v26, %s1304_s10 }
 0x155   :  { %v271_v27 = vpop.permute.xlu0 %270 }
 0x156   :  { %v273_v28 = vmul.f32 %v1242_v24, %v271_v27 }
 0x1c6   :  { %v281_v29 = vpop.permute.xlu1 %280 }
 0x1c7   :  { %v283_v30 = vadd.f32 %v281_v29, %v273_v28 }
 0x1c9   :  { %1243 = vtanh.f32 %v283_v30 }
 0x1d6   :  { %v1244_v31 = vpop.eup %1243 }
 0x1d7   :  { %286 = vrot.lane.b32.xlu1 %v1244_v31, %s1303_s9 }
 0x249   :  { %v287_v32 = vpop.permute.xlu1 %286 }
 0x24a   :  { %v289_v33 = vmul.f32 %v1242_v24, %v287_v32 }
 0x24c   :  { %291 = vrot.lane.b32.xlu0 %v289_v33, %s1304_s10 }
 0x2be   :  { %v292_v34 = vpop.permute.xlu0 %291 }
 0x2bf   :  { %294 = vst.msk [vmem:[%s1583_s4] sm:$0xff] %vm21_vm0, %v292_v34  ;;  %1164 = vmatmul.mubr.msk.f32.vlgmr.msra.gmra.mxu1 %vm21_vm0, %v292_v34 }
 0x2c0   :  { %1178 = vmatpush3.msra.mxu1 %v1341_v3  ;;  %1185 = vmatprep.mubr.msk.f32.mxu1 %vm1302_vm1, %v1301_v2 }
 0x2c1   :  { %1179 = vmatprep.subr.mxu1 %v1301_v2 }
 0x2c2   :  { %1180 = vmatpush3.msra.mxu1 %v1353_v4 }
 0x2c3   :  { %1181 = vmatprep.subr.mxu1 %v1301_v2 }
 0x2c4   :  { %1182 = vmatpush3.msra.mxu1 %v1366_v7 }
 0x2c5   :  { %1183 = vmatprep.subr.mxu1 %v1301_v2 }
 0x2c6   :  { %1184 = vmatpush3.msra.mxu1 %v1376_v9 }
 0x2c7   :  { %1199 = vmatprep.subr.mxu1 %v1301_v2 }
 0x37f   :  { %v365_v36 = vpop.f32.mrf.mxu1 }
 0x380   :  { %v369_v37 = vadd.f32 %v365_v36, %v140_v35 }
 0x381   :  { %v1165_v38 = vpop.f32.mrf.mxu1 }
 0x382   :  { %1245 = vtanh.f32 %v369_v37  ;;  %v1052_v40 = vmul.f32 -1.442695, %v369_v37 }
 0x384   :  { %1247 = vpow2.f32 %v1052_v40 }
 0x38f   :  { %v1246_v39 = vpop.eup %1245 }
 0x390   :  { %379 = vrot.lane.b32.xlu1 %v1246_v39, %s1303_s9 }
 0x391   :  { %v1248_v41 = vpop.eup %1247 }
 0x392   :  { %v373_v42 = vadd.f32 1.0, %v1248_v41 }
 0x394   :  { %1249 = vrcp.f32 %v373_v42 }
 0x3a1   :  { %v1250_v43 = vpop.eup %1249 }
 0x3a2   :  { %v377_v46 = vmul.f32 %v1250_v43, %v283_v30 }
 0x402   :  { %v380_v44 = vpop.permute.xlu1 %379 }
 0x403   :  { %v382_v45 = vmul.f32 %v1250_v43, %v380_v44 }
 0x405   :  { %384 = vrot.lane.b32.xlu0 %v382_v45, %s1304_s10 }
 0x477   :  { %v385_v47 = vpop.permute.xlu0 %384 }
 0x478   :  { %v387_v48 = vadd.f32 %v385_v47, %v377_v46 }
 0x47a   :  { %1251 = vtanh.f32 %v387_v48 }
 0x487   :  { %v1252_v55 = vpop.eup %1251 }
 0x488   :  { %390 = vrot.lane.b32.xlu1 %v1252_v55, %s1303_s9 }
 0x4fa   :  { %v391_v56 = vpop.permute.xlu1 %390 }
 0x4fb   :  { %v393_v57 = vmul.f32 %v1250_v43, %v391_v56  ;;  %v155_v43 = vadd.f32 %v1409_v14, %v1480_v62  ;;  %v160_v62 = vadd.f32 %v1478_v61, %v1409_v14 }
 0x4fd   :  { %395 = vrot.lane.b32.xlu0 %v393_v57, %s1304_s10 }
 0x56f   :  { %v396_v58 = vpop.permute.xlu0 %395 }
 0x570   :  { %1053 = vst.msk [vmem:[%s1583_s4 + $0x8] sm:$0xff] %vm21_vm0, %v396_v58  ;;  %1175 = vmatmul.mubr.msk.f32.vlgmr.msra.gmra.mxu0 %vm21_vm0, %v396_v58 }
 0x571   :  { %1189 = vmatpush3.msra.mxu0 %v1341_v3  ;;  %1196 = vmatprep.mubr.msk.f32.mxu0 %vm1302_vm1, %v1301_v2 }
 0x572   :  { %1190 = vmatprep.subr.mxu0 %v1301_v2 }
 0x573   :  { %1191 = vmatpush3.msra.mxu0 %v1353_v4 }
 0x574   :  { %1192 = vmatprep.subr.mxu0 %v1301_v2 }
 0x575   :  { %1193 = vmatpush3.msra.mxu0 %v1366_v7 }
 0x576   :  { %1194 = vmatprep.subr.mxu0 %v1301_v2 }
 0x577   :  { %1195 = vmatpush3.msra.mxu0 %v1376_v9 }
 0x578   :  { %1210 = vmatprep.subr.mxu0 %v1301_v2 }
 0x630   :  { %v470_v5 = vpop.f32.mrf.mxu0 }
 0x631   :  { %v474_v6 = vadd.f32 %v470_v5, %v145_v1 }
 0x632   :  { %v1176_v8 = vpop.f32.mrf.mxu0 }
 0x633   :  { %1253 = vtanh.f32 %v474_v6  ;;  %v1055_v11 = vmul.f32 -1.442695, %v474_v6 }
 0x635   :  { %1255 = vpow2.f32 %v1055_v11 }
 0x640   :  { %v1254_v10 = vpop.eup %1253 }
 0x641   :  { %484 = vrot.lane.b32.xlu1 %v1254_v10, %s1303_s9 }
 0x642   :  { %v1256_v12 = vpop.eup %1255 }
 0x643   :  { %v478_v13 = vadd.f32 1.0, %v1256_v12 }
 0x645   :  { %1257 = vrcp.f32 %v478_v13 }
 0x652   :  { %v1258_v15 = vpop.eup %1257 }
 0x653   :  { %v482_v18 = vmul.f32 %v1258_v15, %v387_v48 }
 0x6b3   :  { %v485_v16 = vpop.permute.xlu1 %484 }
 0x6b4   :  { %v487_v17 = vmul.f32 %v1258_v15, %v485_v16 }
 0x6b6   :  { %489 = vrot.lane.b32.xlu0 %v487_v17, %s1304_s10 }
 0x728   :  { %v490_v19 = vpop.permute.xlu0 %489 }
 0x729   :  { %v492_v20 = vadd.f32 %v490_v19, %v482_v18  ;;  %v165_v18 = vadd.f32 %v1409_v14, %v1484_v0 }
 0x72b   :  { %1259 = vtanh.f32 %v492_v20 }
 0x738   :  { %v1260_v21 = vpop.eup %1259 }
 0x739   :  { %495 = vrot.lane.b32.xlu1 %v1260_v21, %s1303_s9 }
 0x7ab   :  { %v496_v22 = vpop.permute.xlu1 %495 }
 0x7ac   :  { %v498_v23 = vmul.f32 %v1258_v15, %v496_v22 }
 0x7ae   :  { %500 = vrot.lane.b32.xlu0 %v498_v23, %s1304_s10 }
 0x820   :  { %v501_v24 = vpop.permute.xlu0 %500 }
 0x821   :  { %1056 = vst.msk [vmem:[%s1583_s4 + $0x10] sm:$0xff] %vm21_vm0, %v501_v24  ;;  %1186 = vmatmul.mubr.msk.f32.vlgmr.msra.gmra.mxu1 %vm21_vm0, %v501_v24 }
 0x822   :  { %1200 = vmatpush3.msra.mxu1 %v1341_v3  ;;  %1207 = vmatprep.mubr.msk.f32.mxu1 %vm1302_vm1, %v1301_v2 }
 0x823   :  { %1201 = vmatprep.subr.mxu1 %v1301_v2 }
 0x824   :  { %1202 = vmatpush3.msra.mxu1 %v1353_v4 }
 0x825   :  { %1203 = vmatprep.subr.mxu1 %v1301_v2 }
 0x826   :  { %1204 = vmatpush3.msra.mxu1 %v1366_v7 }
 0x827   :  { %1205 = vmatprep.subr.mxu1 %v1301_v2 }
 0x828   :  { %1206 = vmatpush3.msra.mxu1 %v1376_v9 }
 0x829   :  { %1221 = vmatprep.subr.mxu1 %v1301_v2 }
 0x8e1   :  { %v575_v26 = vpop.f32.mrf.mxu1 }
 0x8e2   :  { %v579_v27 = vadd.f32 %v575_v26, %v150_v25 }
 0x8e3   :  { %v1187_v28 = vpop.f32.mrf.mxu1 }
 0x8e4   :  { %1261 = vtanh.f32 %v579_v27  ;;  %v1058_v30 = vmul.f32 -1.442695, %v579_v27 }
 0x8e6   :  { %1263 = vpow2.f32 %v1058_v30 }
 0x8f1   :  { %v1262_v29 = vpop.eup %1261 }
 0x8f2   :  { %589 = vrot.lane.b32.xlu1 %v1262_v29, %s1303_s9 }
 0x8f3   :  { %v1264_v31 = vpop.eup %1263 }
 0x8f4   :  { %v583_v32 = vadd.f32 1.0, %v1264_v31 }
 0x8f6   :  { %1265 = vrcp.f32 %v583_v32 }
 0x903   :  { %v1266_v33 = vpop.eup %1265 }
 0x904   :  { %v587_v36 = vmul.f32 %v1266_v33, %v492_v20 }
 0x964   :  { %v590_v34 = vpop.permute.xlu1 %589 }
 0x965   :  { %v592_v35 = vmul.f32 %v1266_v33, %v590_v34 }
 0x967   :  { %594 = vrot.lane.b32.xlu0 %v592_v35, %s1304_s10  ;;  %v170_v35 = vadd.f32 %v1482_v63, %v1409_v14 }
 0x9d9   :  { %v595_v37 = vpop.permute.xlu0 %594 }
 0x9da   :  { %v597_v38 = vadd.f32 %v595_v37, %v587_v36 }
 0x9dc   :  { %1267 = vtanh.f32 %v597_v38 }
 0x9e9   :  { %v1268_v39 = vpop.eup %1267 }
 0x9ea   :  { %600 = vrot.lane.b32.xlu1 %v1268_v39, %s1303_s9 }
 0xa5c   :  { %v601_v40 = vpop.permute.xlu1 %600 }
 0xa5d   :  { %v603_v41 = vmul.f32 %v1266_v33, %v601_v40 }
 0xa5f   :  { %605 = vrot.lane.b32.xlu0 %v603_v41, %s1304_s10 }
 0xad1   :  { %v606_v42 = vpop.permute.xlu0 %605 }
 0xad2   :  { %1059 = vst.msk [vmem:[%s1583_s4 + $0x18] sm:$0xff] %vm21_vm0, %v606_v42  ;;  %1197 = vmatmul.mubr.msk.f32.vlgmr.msra.gmra.mxu0 %vm21_vm0, %v606_v42 }
 0xad3   :  { %1211 = vmatpush3.msra.mxu0 %v1341_v3  ;;  %1218 = vmatprep.mubr.msk.f32.mxu0 %vm1302_vm1, %v1301_v2 }
 0xad4   :  { %1212 = vmatprep.subr.mxu0 %v1301_v2 }
 0xad5   :  { %1213 = vmatpush3.msra.mxu0 %v1353_v4 }
 0xad6   :  { %1214 = vmatprep.subr.mxu0 %v1301_v2 }
 0xad7   :  { %1215 = vmatpush3.msra.mxu0 %v1366_v7 }
 0xad8   :  { %1216 = vmatprep.subr.mxu0 %v1301_v2 }
 0xad9   :  { %1217 = vmatpush3.msra.mxu0 %v1376_v9 }
 0xb92   :  { %v680_v44 = vpop.f32.mrf.mxu0 }
 0xb93   :  { %v684_v45 = vadd.f32 %v680_v44, %v155_v43 }
 0xb94   :  { %v1198_v46 = vpop.f32.mrf.mxu0 }
 0xb95   :  { %1269 = vtanh.f32 %v684_v45  ;;  %v1061_v48 = vmul.f32 -1.442695, %v684_v45 }
 0xb97   :  { %1271 = vpow2.f32 %v1061_v48 }
 0xba2   :  { %v1270_v47 = vpop.eup %1269 }
 0xba3   :  { %694 = vrot.lane.b32.xlu1 %v1270_v47, %s1303_s9 }
 0xba4   :  { %v1272_v49 = vpop.eup %1271 }
 0xba5   :  { %v688_v50 = vadd.f32 1.0, %v1272_v49 }
 0xba7   :  { %1273 = vrcp.f32 %v688_v50 }
 0xbb4   :  { %v1274_v51 = vpop.eup %1273 }
 0xbb5   :  { %v692_v54 = vmul.f32 %v1274_v51, %v597_v38 }
 0xc15   :  { %v695_v52 = vpop.permute.xlu1 %694 }
 0xc16   :  { %v697_v53 = vmul.f32 %v1274_v51, %v695_v52 }
 0xc18   :  { %699 = vrot.lane.b32.xlu0 %v697_v53, %s1304_s10 }
 0xc8a   :  { %v700_v55 = vpop.permute.xlu0 %699 }
 0xc8b   :  { %v702_v56 = vadd.f32 %v700_v55, %v692_v54 }
 0xc8d   :  { %1275 = vtanh.f32 %v702_v56 }
 0xc9a   :  { %v1276_v57 = vpop.eup %1275 }
 0xc9b   :  { %705 = vrot.lane.b32.xlu1 %v1276_v57, %s1303_s9 }
 0xd0d   :  { %v706_v58 = vpop.permute.xlu1 %705 }
 0xd0e   :  { %v708_v59 = vmul.f32 %v1274_v51, %v706_v58 }
 0xd10   :  { %710 = vrot.lane.b32.xlu0 %v708_v59, %s1304_s10 }
 0xd82   :  { %v711_v60 = vpop.permute.xlu0 %710 }
 0xd83   :  { %1062 = vst.msk [vmem:[%s1583_s4 + $0x20] sm:$0xff] %vm21_vm0, %v711_v60  ;;  %1208 = vmatmul.mubr.msk.f32.vlgmr.msra.gmra.mxu1 %vm21_vm0, %v711_v60 }
 0xd84   :  { %1222 = vmatpush3.msra.mxu1 %v1341_v3  ;;  %1229 = vmatprep.mubr.msk.f32.mxu1 %vm1302_vm1, %v1301_v2 }
 0xd85   :  { %1223 = vmatprep.subr.mxu1 %v1301_v2 }
 0xd86   :  { %1224 = vmatpush3.msra.mxu1 %v1353_v4 }
 0xd87   :  { %1225 = vmatprep.subr.mxu1 %v1301_v2 }
 0xd88   :  { %1226 = vmatpush3.msra.mxu1 %v1366_v7 }
 0xd89   :  { %1227 = vmatprep.subr.mxu1 %v1301_v2 }
 0xd8a   :  { %1228 = vmatpush3.msra.mxu1 %v1376_v9 }
 0xe43   :  { %v785_v1 = vpop.f32.mrf.mxu1 }
 0xe44   :  { %v789_v3 = vadd.f32 %v785_v1, %v160_v62 }
 0xe45   :  { %v1209_v5 = vpop.f32.mrf.mxu1 }
 0xe46   :  { %1277 = vtanh.f32 %v789_v3  ;;  %v1064_v8 = vmul.f32 -1.442695, %v789_v3 }
 0xe48   :  { %1279 = vpow2.f32 %v1064_v8 }
 0xe53   :  { %v1278_v6 = vpop.eup %1277 }
 0xe54   :  { %799 = vrot.lane.b32.xlu1 %v1278_v6, %s1303_s9 }
 0xe55   :  { %v1280_v4 = vpop.eup %1279 }
 0xe56   :  { %v793_v10 = vadd.f32 1.0, %v1280_v4 }
 0xe58   :  { %1281 = vrcp.f32 %v793_v10 }
 0xe65   :  { %v1282_v7 = vpop.eup %1281 }
 0xe66   :  { %v797_v9 = vmul.f32 %v1282_v7, %v702_v56 }
 0xec6   :  { %v800_v11 = vpop.permute.xlu1 %799 }
 0xec7   :  { %v802_v2 = vmul.f32 %v1282_v7, %v800_v11 }
 0xec9   :  { %804 = vrot.lane.b32.xlu0 %v802_v2, %s1304_s10 }
 0xf3b   :  { %v805_v12 = vpop.permute.xlu0 %804 }
 0xf3c   :  { %v807_v61 = vadd.f32 %v805_v12, %v797_v9 }
 0xf3e   :  { %1283 = vtanh.f32 %v807_v61 }
 0xf4b   :  { %v1284_v13 = vpop.eup %1283 }
 0xf4c   :  { %810 = vrot.lane.b32.xlu1 %v1284_v13, %s1303_s9 }
 0xfbe   :  { %v811_v15 = vpop.permute.xlu1 %810 }
 0xfbf   :  { %v813_v16 = vmul.f32 %v1282_v7, %v811_v15 }
 0xfc1   :  { %815 = vrot.lane.b32.xlu0 %v813_v16, %s1304_s10 }
0x1033   :  { %v816_v17 = vpop.permute.xlu0 %815 }
0x1034   :  { %1065 = vst.msk [vmem:[%s1583_s4 + $0x28] sm:$0xff] %vm21_vm0, %v816_v17  ;;  %1219 = vmatmul.mubr.msk.f32.vlgmr.msra.gmra.mxu0 %vm21_vm0, %v816_v17 }
0x10f4   :  { %v890_v19 = vpop.f32.mrf.mxu0 }
0x10f5   :  { %v894_v20 = vadd.f32 %v890_v19, %v165_v18 }
0x10f6   :  { %v1220_v21 = vpop.f32.mrf.mxu0 }
0x10f7   :  { %1285 = vtanh.f32 %v894_v20  ;;  %v1067_v23 = vmul.f32 -1.442695, %v894_v20 }
0x10f9   :  { %1287 = vpow2.f32 %v1067_v23 }
0x1104   :  { %v1286_v22 = vpop.eup %1285 }
0x1105   :  { %904 = vrot.lane.b32.xlu1 %v1286_v22, %s1303_s9 }
0x1106   :  { %v1288_v24 = vpop.eup %1287 }
0x1107   :  { %v898_v25 = vadd.f32 1.0, %v1288_v24 }
0x1109   :  { %1289 = vrcp.f32 %v898_v25 }
0x1116   :  { %v1290_v26 = vpop.eup %1289 }
0x1117   :  { %v902_v29 = vmul.f32 %v1290_v26, %v807_v61 }
0x1177   :  { %v905_v27 = vpop.permute.xlu1 %904 }
0x1178   :  { %v907_v28 = vmul.f32 %v1290_v26, %v905_v27 }
0x117a   :  { %909 = vrot.lane.b32.xlu0 %v907_v28, %s1304_s10 }
0x11ec   :  { %v910_v30 = vpop.permute.xlu0 %909 }
0x11ed   :  { %v912_v0 = vadd.f32 %v910_v30, %v902_v29 }
0x11ef   :  { %1291 = vtanh.f32 %v912_v0 }
0x11fc   :  { %v1292_v31 = vpop.eup %1291 }
0x11fd   :  { %915 = vrot.lane.b32.xlu1 %v1292_v31, %s1303_s9 }
0x126f   :  { %v916_v32 = vpop.permute.xlu1 %915 }
0x1270   :  { %v918_v33 = vmul.f32 %v1290_v26, %v916_v32 }
0x1272   :  { %920 = vrot.lane.b32.xlu0 %v918_v33, %s1304_s10 }
0x12e4   :  { %v921_v34 = vpop.permute.xlu0 %920 }
0x12e5   :  { %1068 = vst.msk [vmem:[%s1583_s4 + $0x30] sm:$0xff] %vm21_vm0, %v921_v34  ;;  %1230 = vmatmul.mubr.msk.f32.vlgmr.msra.gmra.mxu1 %vm21_vm0, %v921_v34 }
0x13a5   :  { %v995_v36 = vpop.f32.mrf.mxu1 }
0x13a6   :  { %v999_v37 = vadd.f32 %v995_v36, %v170_v35 }
0x13a7   :  { %v1231_v38 = vpop.f32.mrf.mxu1 }
0x13a8   :  { %1293 = vtanh.f32 %v999_v37  ;;  %v1070_v40 = vmul.f32 -1.442695, %v999_v37 }
0x13aa   :  { %1295 = vpow2.f32 %v1070_v40 }
0x13b5   :  { %v1294_v39 = vpop.eup %1293 }
0x13b6   :  { %1009 = vrot.lane.b32.xlu1 %v1294_v39, %s1303_s9 }
0x13b7   :  { %v1296_v41 = vpop.eup %1295 }
0x13b8   :  { %v1003_v42 = vadd.f32 1.0, %v1296_v41 }
0x13ba   :  { %1297 = vrcp.f32 %v1003_v42 }
0x13c7   :  { %v1298_v43 = vpop.eup %1297 }
0x13c8   :  { %v1007_v46 = vmul.f32 %v1298_v43, %v912_v0 }
0x1428   :  { %v1010_v44 = vpop.permute.xlu1 %1009 }
0x1429   :  { %v1012_v45 = vmul.f32 %v1298_v43, %v1010_v44 }
0x142b   :  { %1014 = vrot.lane.b32.xlu0 %v1012_v45, %s1304_s10 }
0x149d   :  { %v1015_v47 = vpop.permute.xlu0 %1014 }
0x149e   :  { %v1017_v14 = vadd.f32 %v1015_v47, %v1007_v46 }
0x14a0   :  { %1299 = vtanh.f32 %v1017_v14 }
0x14ad   :  { %v1300_v63 = vpop.eup %1299 }
0x14ae   :  { %1020 = vrot.lane.b32.xlu1 %v1300_v63, %s1303_s9 }
0x14b2   :  { %1032 = vrot.lane.b32.xlu1 %v1017_v14, %s1305_s1 }
0x1520   :  { %v1021_v48 = vpop.permute.xlu1 %1020 }
0x1521   :  { %v1023_v49 = vmul.f32 %v1298_v43, %v1021_v48 }
0x1523   :  { %1025 = vrot.lane.b32.xlu0 %v1023_v49, %s1304_s10 }
0x1524   :  { %v1033_v50 = vpop.permute.xlu1 %1032 }
0x1525   :  { %1035 = vst.msk [vmem:[#allocation3] sm:$0xff] %vm21_vm0, %v1033_v50 }
0x1595   :  { %v1026_v51 = vpop.permute.xlu0 %1025 }
0x1596   :  { %1071 = vst.msk [vmem:[%s1583_s4 + $0x38] sm:$0xff] %vm21_vm0, %v1026_v51  ;;  %1030 = vst.msk [vmem:[#allocation2] sm:$0xff] %vm21_vm0, %v1026_v51 }

</bundles_post_ra>
